<compile_context>
chip_gen: v7x
topology: tpu7x:2x2x1
jax: 0.10.0
libtpu: 0.0.40
codegen_flags: <defaults>
</compile_context>

<pallas_src>
import jax
import jax.numpy as jnp
import numpy as np
from jax.experimental import pallas as pl
from jax.experimental.pallas import tpu as pltpu


# ------------------------- fully fused forward kernel -------------------------

def _make_gcn_kernel(num_behaviors, num_layers, user_num, item_num, hidden):
    B, L, U, I, H = num_behaviors, num_layers, user_num, item_num, hidden
    inv_b = 1.0 / float(B)

    def kernel(a_ref, at_ref, ue_ref, ie_ref, uw_ref, iw_ref, ucw_ref, icw_ref,
               u_out_ref, i_out_ref):
        # a_ref:   [B*U, I]   behavior-stacked adjacency rows (bf16)
        # at_ref:  [B*I, U]   behavior-stacked transposed adjacency rows (bf16)
        # ue_ref:  [U, H]     initial user embedding (f32)
        # ie_ref:  [I, H]     initial item embedding (f32)
        # uw_ref:  [L, H, H]  per-layer user projection weights
        # iw_ref:  [L, H, H]  per-layer item projection weights
        # ucw_ref: [L*H, H]   user concat projection weight
        # icw_ref: [L*H, H]   item concat projection weight
        # u_out_ref: [(B+1)*U, H]  rows [:U] = mean-chain output, [U:] = behaviors
        # i_out_ref: [(B+1)*I, H]
        a = a_ref[...]
        at = at_ref[...]
        ue = ue_ref[...]
        ie = ie_ref[...]

        u_hist = []
        i_hist = []
        for l in range(L):                                   # static unroll
            # One fat spmm per side covering ALL behaviors (B*M rows on the MXU).
            us = jnp.dot(a, ie.astype(a.dtype),
                         preferred_element_type=jnp.float32)        # [B*U, H]
            its = jnp.dot(at, ue.astype(at.dtype),
                          preferred_element_type=jnp.float32)       # [B*I, H]
            # Behavior mean = sum of the B row blocks (mean commutes with @W).
            us_m = us[0:U]
            its_m = its[0:I]
            for b in range(1, B):
                us_m = us_m + us[b * U:(b + 1) * U]
                its_m = its_m + its[b * I:(b + 1) * I]
            # Pack [mean ; behaviors] so the shared @W projection + sigmoid of
            # this layer is ONE [(B+1)*M, H] @ [H, H] matmul per side.
            u_all = jnp.concatenate([us_m * inv_b, us], axis=0)     # [(B+1)*U, H]
            i_all = jnp.concatenate([its_m * inv_b, its], axis=0)   # [(B+1)*I, H]
            uy = jax.nn.sigmoid(jnp.dot(u_all, uw_ref[l],
                                        preferred_element_type=jnp.float32))
            iy = jax.nn.sigmoid(jnp.dot(i_all, iw_ref[l],
                                        preferred_element_type=jnp.float32))
            # Next-layer embeddings are the mean rows (sigmoid(mean @ W)),
            # exactly like the PyTorch reference.
            ue = uy[0:U]
            ie = iy[0:I]
            u_hist.append(uy)
            i_hist.append(iy)

        # Final concat-over-layers projection: single [(B+1)*M, L*H] @ [L*H, H]
        # matmul per side (no [M, L*H] / [B, M, L*H] buffers ever hit HBM).
        u_cat = jnp.concatenate(u_hist, axis=1)                     # [(B+1)*U, L*H]
        i_cat = jnp.concatenate(i_hist, axis=1)                     # [(B+1)*I, L*H]
        u_out_ref[...] = jnp.dot(
            u_cat, ucw_ref[...], preferred_element_type=jnp.float32
        ).astype(u_out_ref.dtype)
        i_out_ref[...] = jnp.dot(
            i_cat, icw_ref[...], preferred_element_type=jnp.float32
        ).astype(i_out_ref.dtype)

    return kernel


def gcn_forward(params, behavior_A_stack, behavior_AT_stack):
    """Mirrors GCN.forward of the PyTorch reference with one fused Pallas call.

    behavior_A_stack:  [B, userNum, itemNum]  (dense bf16 stand-in for sparse 'A')
    behavior_AT_stack: [B, itemNum, userNum]  (dense bf16 stand-in for sparse 'AT')
    """
    B, U, I = behavior_A_stack.shape
    H = params["user_embedding"].shape[1]
    L = len(params["layers"])

    uw = jnp.stack([lp["u_w"] for lp in params["layers"]], axis=0)   # [L, H, H]
    iw = jnp.stack([lp["i_w"] for lp in params["layers"]], axis=0)   # [L, H, H]
    a2 = behavior_A_stack.reshape(B * U, I)     # wrapper-side layout plumbing
    at2 = behavior_AT_stack.reshape(B * I, U)

    flops = L * (2 * B * U * I * H + 2 * B * I * U * H
                 + 2 * (B + 1) * U * H * H + 2 * (B + 1) * I * H * H)
    flops += 2 * (B + 1) * (U + I) * (L * H) * H
    cost = pl.CostEstimate(
        flops=flops,
        transcendentals=L * (B + 1) * (U + I) * H,
        bytes_accessed=(2 * (B * U * I + B * I * U)                   # bf16 adj
                        + 4 * ((U + I) * H + 4 * L * H * H
                               + (B + 1) * (U + I) * H)),
    )

    u_slab, i_slab = pl.pallas_call(
        _make_gcn_kernel(B, L, U, I, H),
        out_shape=(jax.ShapeDtypeStruct(((B + 1) * U, H), jnp.float32),
                   jax.ShapeDtypeStruct(((B + 1) * I, H), jnp.float32)),
        grid=(1,),
        in_specs=[
            pl.BlockSpec((B * U, I), lambda i: (0, 0)),
            pl.BlockSpec((B * I, U), lambda i: (0, 0)),
            pl.BlockSpec((U, H), lambda i: (0, 0)),
            pl.BlockSpec((I, H), lambda i: (0, 0)),
            pl.BlockSpec((L, H, H), lambda i: (0, 0, 0)),
            pl.BlockSpec((L, H, H), lambda i: (0, 0, 0)),
            pl.BlockSpec((L * H, H), lambda i: (0, 0)),
            pl.BlockSpec((L * H, H), lambda i: (0, 0)),
        ],
        out_specs=(
            pl.BlockSpec(((B + 1) * U, H), lambda i: (0, 0)),
            pl.BlockSpec(((B + 1) * I, H), lambda i: (0, 0)),
        ),
        compiler_params=pltpu.CompilerParams(
            dimension_semantics=("arbitrary",)),
        cost_estimate=cost,
    )(a2, at2, params["user_embedding"], params["item_embedding"],
      uw, iw, params["u_concatenation_w"], params["i_concatenation_w"])

    user_embedding = u_slab[:U]                          # [U, H]
    item_embedding = i_slab[:I]                          # [I, H]
    user_embeddings = u_slab[U:].reshape(B, U, H)        # [B, U, H]
    item_embeddings = i_slab[I:].reshape(B, I, H)        # [B, I, H]
    return user_embedding, item_embedding, user_embeddings, item_embeddings


# -------------------------------- model init ----------------------------------

def xavier_uniform(key, shape, dtype=jnp.float32):
    fan_in, fan_out = shape[-2], shape[-1]
    bound = (6.0 / (fan_in + fan_out)) ** 0.5
    return jax.random.uniform(key, shape, dtype, minval=-bound, maxval=bound)


def init_gcn_params(key, user_num, item_num, hidden_dim, num_layers):
    keys = jax.random.split(key, 4 + 2 * num_layers)
    params = {
        "user_embedding": xavier_uniform(keys[0], (user_num, hidden_dim)),
        "item_embedding": xavier_uniform(keys[1], (item_num, hidden_dim)),
        "u_concatenation_w": xavier_uniform(
            keys[2], (num_layers * hidden_dim, hidden_dim)),
        "i_concatenation_w": xavier_uniform(
            keys[3], (num_layers * hidden_dim, hidden_dim)),
        "layers": [],
    }
    for l in range(num_layers):
        params["layers"].append({
            "u_w": xavier_uniform(keys[4 + 2 * l], (hidden_dim, hidden_dim)),
            "i_w": xavier_uniform(keys[5 + 2 * l], (hidden_dim, hidden_dim)),
        })
    return params


# --------------------------- pure-JAX reference --------------------------------

def gcn_forward_ref(params, A_stack, AT_stack):
    A = A_stack.astype(jnp.float32)
    AT = AT_stack.astype(jnp.float32)
    ue, ie = params["user_embedding"], params["item_embedding"]
    mu, mi, bu, bi = [], [], [], []
    for lp in params["layers"]:
        us = jnp.einsum("bui,ih->buh", A, ie)
        its = jnp.einsum("biu,uh->bih", AT, ue)
        ue_n = jax.nn.sigmoid(jnp.mean(us, axis=0) @ lp["u_w"])
        ie_n = jax.nn.sigmoid(jnp.mean(its, axis=0) @ lp["i_w"])
        bu.append(jax.nn.sigmoid(us @ lp["u_w"]))
        bi.append(jax.nn.sigmoid(its @ lp["i_w"]))
        mu.append(ue_n)
        mi.append(ie_n)
        ue, ie = ue_n, ie_n
    ue = jnp.concatenate(mu, axis=1) @ params["u_concatenation_w"]
    ie = jnp.concatenate(mi, axis=1) @ params["i_concatenation_w"]
    bus = jnp.concatenate(bu, axis=2) @ params["u_concatenation_w"]
    bis = jnp.concatenate(bi, axis=2) @ params["i_concatenation_w"]
    return ue, ie, bus, bis


# ----------------------------------- main --------------------------------------

if __name__ == "__main__":
    USER_NUM = 64
    ITEM_NUM = 48
    HIDDEN = 32
    NUM_BEHAVIORS = 2
    NUM_LAYERS = 2          # args.gnn_layer = "[32, 32]"

    key = jax.random.PRNGKey(0)
    k_params, k_adj = jax.random.split(key)

    params = init_gcn_params(k_params, USER_NUM, ITEM_NUM, HIDDEN, NUM_LAYERS)

    # Synthetic dense behavior adjacency matrices (stand-ins for sparse A / AT),
    # row-normalized like typical GCN propagation, stored as bf16 (streamed
    # dtype); accumulation inside the kernel stays f32.
    adj_keys = jax.random.split(k_adj, NUM_BEHAVIORS)
    A_list, AT_list = [], []
    for kb in adj_keys:
        mask = (jax.random.uniform(kb, (USER_NUM, ITEM_NUM)) < 0.2).astype(
            jnp.float32)
        A = mask / jnp.maximum(mask.sum(axis=1, keepdims=True), 1.0)
        AT = mask.T / jnp.maximum(mask.T.sum(axis=1, keepdims=True), 1.0)
        A_list.append(A.astype(jnp.bfloat16))
        AT_list.append(AT.astype(jnp.bfloat16))
    A_stack = jnp.stack(A_list, axis=0)      # [B, U, I] bf16
    AT_stack = jnp.stack(AT_list, axis=0)    # [B, I, U] bf16

    fwd = jax.jit(gcn_forward)
    u_emb, i_emb, u_embs, i_embs = fwd(params, A_stack, AT_stack)
    jax.block_until_ready((u_emb, i_emb, u_embs, i_embs))

    assert u_emb.shape == (USER_NUM, HIDDEN)
    assert i_emb.shape == (ITEM_NUM, HIDDEN)
    assert u_embs.shape == (NUM_BEHAVIORS, USER_NUM, HIDDEN)
    assert i_embs.shape == (NUM_BEHAVIORS, ITEM_NUM, HIDDEN)

    # Sanity check against a pure-JAX reference (loose tol: bf16 adjacency /
    # matmul-precision / reassociation differences only; structural bugs would
    # be O(0.1+)).
    ru, ri, rus, ris = gcn_forward_ref(params, A_stack, AT_stack)
    np.testing.assert_allclose(np.asarray(u_emb), np.asarray(ru), rtol=2e-2, atol=2e-2)
    np.testing.assert_allclose(np.asarray(i_emb), np.asarray(ri), rtol=2e-2, atol=2e-2)
    np.testing.assert_allclose(np.asarray(u_embs), np.asarray(rus), rtol=2e-2, atol=2e-2)
    np.testing.assert_allclose(np.asarray(i_embs), np.asarray(ris), rtol=2e-2, atol=2e-2)

    print("KERNEL_OK")
</pallas_src>

<mosaic_0001>
module attributes {stable_mosaic.version = 11 : i64} {
  func.func @kernel(%arg0: i32, %arg1: memref<128x48xbf16, #tpu.memory_space<vmem>>, %arg2: memref<96x64xbf16, #tpu.memory_space<vmem>>, %arg3: memref<64x32xf32, #tpu.memory_space<vmem>>, %arg4: memref<48x32xf32, #tpu.memory_space<vmem>>, %arg5: memref<2x32x32xf32, #tpu.memory_space<vmem>>, %arg6: memref<2x32x32xf32, #tpu.memory_space<vmem>>, %arg7: memref<64x32xf32, #tpu.memory_space<vmem>>, %arg8: memref<64x32xf32, #tpu.memory_space<vmem>>, %arg9: memref<192x32xf32, #tpu.memory_space<vmem>>, %arg10: memref<144x32xf32, #tpu.memory_space<vmem>>) attributes {dimension_semantics = [#tpu.dimension_semantics<arbitrary>], iteration_bounds = array<i64: 1>, scalar_prefetch = 0 : i64, scratch_operands = 0 : i64, tpu.core_type = #tpu.core_type<tc>, window_params = [{pipeline_mode = #tpu.pipeline_mode<synchronous>, transform_indices = @transform_0, window_bounds = array<i64: 128, 48>}, {pipeline_mode = #tpu.pipeline_mode<synchronous>, transform_indices = @transform_1, window_bounds = array<i64: 96, 64>}, {pipeline_mode = #tpu.pipeline_mode<synchronous>, transform_indices = @transform_2, window_bounds = array<i64: 64, 32>}, {pipeline_mode = #tpu.pipeline_mode<synchronous>, transform_indices = @transform_3, window_bounds = array<i64: 48, 32>}, {pipeline_mode = #tpu.pipeline_mode<synchronous>, transform_indices = @transform_4, window_bounds = array<i64: 2, 32, 32>}, {pipeline_mode = #tpu.pipeline_mode<synchronous>, transform_indices = @transform_5, window_bounds = array<i64: 2, 32, 32>}, {pipeline_mode = #tpu.pipeline_mode<synchronous>, transform_indices = @transform_6, window_bounds = array<i64: 64, 32>}, {pipeline_mode = #tpu.pipeline_mode<synchronous>, transform_indices = @transform_7, window_bounds = array<i64: 64, 32>}, {pipeline_mode = #tpu.pipeline_mode<synchronous>, transform_indices = @transform_8, window_bounds = array<i64: 192, 32>}, {pipeline_mode = #tpu.pipeline_mode<synchronous>, transform_indices = @transform_9, window_bounds = array<i64: 144, 32>}]} {
    %c0 = arith.constant 0 : index
    %c0_0 = arith.constant 0 : index
    %0 = vector.load %arg1[%c0, %c0_0] : memref<128x48xbf16, #tpu.memory_space<vmem>>, vector<128x48xbf16>
    %c0_1 = arith.constant 0 : index
    %c0_2 = arith.constant 0 : index
    %1 = vector.load %arg2[%c0_1, %c0_2] : memref<96x64xbf16, #tpu.memory_space<vmem>>, vector<96x64xbf16>
    %c0_3 = arith.constant 0 : index
    %c0_4 = arith.constant 0 : index
    %2 = vector.load %arg3[%c0_3, %c0_4] : memref<64x32xf32, #tpu.memory_space<vmem>>, vector<64x32xf32>
    %c0_5 = arith.constant 0 : index
    %c0_6 = arith.constant 0 : index
    %3 = vector.load %arg4[%c0_5, %c0_6] : memref<48x32xf32, #tpu.memory_space<vmem>>, vector<48x32xf32>
    %4 = arith.truncf %3 : vector<48x32xf32> to vector<48x32xbf16>
    %cst = arith.constant dense<0.000000e+00> : vector<128x32xf32>
    %5 = tpu.matmul %0, %4, %cst {dimension_numbers = #tpu.dot_dimension_numbers<[1], [0], [0], [1], [0, 0, 1, 1], [], []>} : vector<128x48xbf16>, vector<48x32xbf16>, vector<128x32xf32> -> vector<128x32xf32>
    %6 = arith.truncf %2 : vector<64x32xf32> to vector<64x32xbf16>
    %cst_7 = arith.constant dense<0.000000e+00> : vector<96x32xf32>
    %7 = tpu.matmul %1, %6, %cst_7 {dimension_numbers = #tpu.dot_dimension_numbers<[1], [0], [0], [1], [0, 0, 1, 1], [], []>} : vector<96x64xbf16>, vector<64x32xbf16>, vector<96x32xf32> -> vector<96x32xf32>
    %8 = vector.extract_strided_slice %5 {offsets = [0, 0], sizes = [64, 32], strides = [1, 1]} : vector<128x32xf32> to vector<64x32xf32>
    %9 = vector.extract_strided_slice %7 {offsets = [0, 0], sizes = [48, 32], strides = [1, 1]} : vector<96x32xf32> to vector<48x32xf32>
    %10 = vector.extract_strided_slice %5 {offsets = [64, 0], sizes = [64, 32], strides = [1, 1]} : vector<128x32xf32> to vector<64x32xf32>
    %11 = arith.addf %8, %10 : vector<64x32xf32>
    %12 = vector.extract_strided_slice %7 {offsets = [48, 0], sizes = [48, 32], strides = [1, 1]} : vector<96x32xf32> to vector<48x32xf32>
    %13 = arith.addf %9, %12 : vector<48x32xf32>
    %cst_8 = arith.constant 5.000000e-01 : f32
    %14 = vector.broadcast %cst_8 : f32 to vector<64x32xf32>
    %15 = arith.mulf %11, %14 : vector<64x32xf32>
    %16 = tpu.concatenate %15, %5 in 0 : vector<64x32xf32>, vector<128x32xf32> -> vector<192x32xf32>
    %cst_9 = arith.constant 5.000000e-01 : f32
    %17 = vector.broadcast %cst_9 : f32 to vector<48x32xf32>
    %18 = arith.mulf %13, %17 : vector<48x32xf32>
    %19 = tpu.concatenate %18, %7 in 0 : vector<48x32xf32>, vector<96x32xf32> -> vector<144x32xf32>
    %c0_10 = arith.constant 0 : index
    %c0_11 = arith.constant 0 : index
    %c0_12 = arith.constant 0 : index
    %20 = vector.load %arg5[%c0_10, %c0_11, %c0_12] : memref<2x32x32xf32, #tpu.memory_space<vmem>>, vector<1x32x32xf32>
    %21 = vector.shape_cast %20 : vector<1x32x32xf32> to vector<32x32xf32>
    %cst_13 = arith.constant dense<0.000000e+00> : vector<192x32xf32>
    %22 = tpu.matmul %16, %21, %cst_13 {dimension_numbers = #tpu.dot_dimension_numbers<[1], [0], [0], [1], [0, 0, 1, 1], [], []>} : vector<192x32xf32>, vector<32x32xf32>, vector<192x32xf32> -> vector<192x32xf32>
    %23 = arith.negf %22 : vector<192x32xf32>
    %24 = math.exp %23 : vector<192x32xf32>
    %cst_14 = arith.constant 1.000000e+00 : f32
    %25 = vector.broadcast %cst_14 : f32 to vector<192x32xf32>
    %26 = arith.addf %25, %24 : vector<192x32xf32>
    %27 = arith.divf %25, %26 : vector<192x32xf32>
    %c0_15 = arith.constant 0 : index
    %c0_16 = arith.constant 0 : index
    %c0_17 = arith.constant 0 : index
    %28 = vector.load %arg6[%c0_15, %c0_16, %c0_17] : memref<2x32x32xf32, #tpu.memory_space<vmem>>, vector<1x32x32xf32>
    %29 = vector.shape_cast %28 : vector<1x32x32xf32> to vector<32x32xf32>
    %cst_18 = arith.constant dense<0.000000e+00> : vector<144x32xf32>
    %30 = tpu.matmul %19, %29, %cst_18 {dimension_numbers = #tpu.dot_dimension_numbers<[1], [0], [0], [1], [0, 0, 1, 1], [], []>} : vector<144x32xf32>, vector<32x32xf32>, vector<144x32xf32> -> vector<144x32xf32>
    %31 = arith.negf %30 : vector<144x32xf32>
    %32 = math.exp %31 : vector<144x32xf32>
    %cst_19 = arith.constant 1.000000e+00 : f32
    %33 = vector.broadcast %cst_19 : f32 to vector<144x32xf32>
    %34 = arith.addf %33, %32 : vector<144x32xf32>
    %35 = arith.divf %33, %34 : vector<144x32xf32>
    %36 = vector.extract_strided_slice %27 {offsets = [0, 0], sizes = [64, 32], strides = [1, 1]} : vector<192x32xf32> to vector<64x32xf32>
    %37 = vector.extract_strided_slice %35 {offsets = [0, 0], sizes = [48, 32], strides = [1, 1]} : vector<144x32xf32> to vector<48x32xf32>
    %38 = arith.truncf %37 : vector<48x32xf32> to vector<48x32xbf16>
    %cst_20 = arith.constant dense<0.000000e+00> : vector<128x32xf32>
    %39 = tpu.matmul %0, %38, %cst_20 {dimension_numbers = #tpu.dot_dimension_numbers<[1], [0], [0], [1], [0, 0, 1, 1], [], []>} : vector<128x48xbf16>, vector<48x32xbf16>, vector<128x32xf32> -> vector<128x32xf32>
    %40 = arith.truncf %36 : vector<64x32xf32> to vector<64x32xbf16>
    %cst_21 = arith.constant dense<0.000000e+00> : vector<96x32xf32>
    %41 = tpu.matmul %1, %40, %cst_21 {dimension_numbers = #tpu.dot_dimension_numbers<[1], [0], [0], [1], [0, 0, 1, 1], [], []>} : vector<96x64xbf16>, vector<64x32xbf16>, vector<96x32xf32> -> vector<96x32xf32>
    %42 = vector.extract_strided_slice %39 {offsets = [0, 0], sizes = [64, 32], strides = [1, 1]} : vector<128x32xf32> to vector<64x32xf32>
    %43 = vector.extract_strided_slice %41 {offsets = [0, 0], sizes = [48, 32], strides = [1, 1]} : vector<96x32xf32> to vector<48x32xf32>
    %44 = vector.extract_strided_slice %39 {offsets = [64, 0], sizes = [64, 32], strides = [1, 1]} : vector<128x32xf32> to vector<64x32xf32>
    %45 = arith.addf %42, %44 : vector<64x32xf32>
    %46 = vector.extract_strided_slice %41 {offsets = [48, 0], sizes = [48, 32], strides = [1, 1]} : vector<96x32xf32> to vector<48x32xf32>
    %47 = arith.addf %43, %46 : vector<48x32xf32>
    %cst_22 = arith.constant 5.000000e-01 : f32
    %48 = vector.broadcast %cst_22 : f32 to vector<64x32xf32>
    %49 = arith.mulf %45, %48 : vector<64x32xf32>
    %50 = tpu.concatenate %49, %39 in 0 : vector<64x32xf32>, vector<128x32xf32> -> vector<192x32xf32>
    %cst_23 = arith.constant 5.000000e-01 : f32
    %51 = vector.broadcast %cst_23 : f32 to vector<48x32xf32>
    %52 = arith.mulf %47, %51 : vector<48x32xf32>
    %53 = tpu.concatenate %52, %41 in 0 : vector<48x32xf32>, vector<96x32xf32> -> vector<144x32xf32>
    %c1 = arith.constant 1 : index
    %c0_24 = arith.constant 0 : index
    %c0_25 = arith.constant 0 : index
    %54 = vector.load %arg5[%c1, %c0_24, %c0_25] : memref<2x32x32xf32, #tpu.memory_space<vmem>>, vector<1x32x32xf32>
    %55 = vector.shape_cast %54 : vector<1x32x32xf32> to vector<32x32xf32>
    %cst_26 = arith.constant dense<0.000000e+00> : vector<192x32xf32>
    %56 = tpu.matmul %50, %55, %cst_26 {dimension_numbers = #tpu.dot_dimension_numbers<[1], [0], [0], [1], [0, 0, 1, 1], [], []>} : vector<192x32xf32>, vector<32x32xf32>, vector<192x32xf32> -> vector<192x32xf32>
    %57 = arith.negf %56 : vector<192x32xf32>
    %58 = math.exp %57 : vector<192x32xf32>
    %cst_27 = arith.constant 1.000000e+00 : f32
    %59 = vector.broadcast %cst_27 : f32 to vector<192x32xf32>
    %60 = arith.addf %59, %58 : vector<192x32xf32>
    %61 = arith.divf %59, %60 : vector<192x32xf32>
    %c1_28 = arith.constant 1 : index
    %c0_29 = arith.constant 0 : index
    %c0_30 = arith.constant 0 : index
    %62 = vector.load %arg6[%c1_28, %c0_29, %c0_30] : memref<2x32x32xf32, #tpu.memory_space<vmem>>, vector<1x32x32xf32>
    %63 = vector.shape_cast %62 : vector<1x32x32xf32> to vector<32x32xf32>
    %cst_31 = arith.constant dense<0.000000e+00> : vector<144x32xf32>
    %64 = tpu.matmul %53, %63, %cst_31 {dimension_numbers = #tpu.dot_dimension_numbers<[1], [0], [0], [1], [0, 0, 1, 1], [], []>} : vector<144x32xf32>, vector<32x32xf32>, vector<144x32xf32> -> vector<144x32xf32>
    %65 = arith.negf %64 : vector<144x32xf32>
    %66 = math.exp %65 : vector<144x32xf32>
    %cst_32 = arith.constant 1.000000e+00 : f32
    %67 = vector.broadcast %cst_32 : f32 to vector<144x32xf32>
    %68 = arith.addf %67, %66 : vector<144x32xf32>
    %69 = arith.divf %67, %68 : vector<144x32xf32>
    %70 = tpu.concatenate %27, %61 in 1 : vector<192x32xf32>, vector<192x32xf32> -> vector<192x64xf32>
    %71 = tpu.concatenate %35, %69 in 1 : vector<144x32xf32>, vector<144x32xf32> -> vector<144x64xf32>
    %c0_33 = arith.constant 0 : index
    %c0_34 = arith.constant 0 : index
    %72 = vector.load %arg7[%c0_33, %c0_34] : memref<64x32xf32, #tpu.memory_space<vmem>>, vector<64x32xf32>
    %cst_35 = arith.constant dense<0.000000e+00> : vector<192x32xf32>
    %73 = tpu.matmul %70, %72, %cst_35 {dimension_numbers = #tpu.dot_dimension_numbers<[1], [0], [0], [1], [0, 0, 1, 1], [], []>} : vector<192x64xf32>, vector<64x32xf32>, vector<192x32xf32> -> vector<192x32xf32>
    %c0_36 = arith.constant 0 : index
    %c0_37 = arith.constant 0 : index
    %74 = vector.load %arg9[%c0_36, %c0_37] : memref<192x32xf32, #tpu.memory_space<vmem>>, vector<192x32xf32>
    tpu.vector_store %arg9[%c0_36, %c0_37], %73 {strides = array<i32>} : memref<192x32xf32, #tpu.memory_space<vmem>>, vector<192x32xf32>,
    %c0_38 = arith.constant 0 : index
    %c0_39 = arith.constant 0 : index
    %75 = vector.load %arg8[%c0_38, %c0_39] : memref<64x32xf32, #tpu.memory_space<vmem>>, vector<64x32xf32>
    %cst_40 = arith.constant dense<0.000000e+00> : vector<144x32xf32>
    %76 = tpu.matmul %71, %75, %cst_40 {dimension_numbers = #tpu.dot_dimension_numbers<[1], [0], [0], [1], [0, 0, 1, 1], [], []>} : vector<144x64xf32>, vector<64x32xf32>, vector<144x32xf32> -> vector<144x32xf32>
    %c0_41 = arith.constant 0 : index
    %c0_42 = arith.constant 0 : index
    %77 = vector.load %arg10[%c0_41, %c0_42] : memref<144x32xf32, #tpu.memory_space<vmem>>, vector<144x32xf32>
    tpu.vector_store %arg10[%c0_41, %c0_42], %76 {strides = array<i32>} : memref<144x32xf32, #tpu.memory_space<vmem>>, vector<144x32xf32>,
    return
  }
  func.func @transform_0(%arg0: i32) -> (i32, i32) {
    %c0_i32 = arith.constant 0 : i32
    %c0_i32_0 = arith.constant 0 : i32
    %c0_i32_1 = arith.constant 0 : i32
    return %c0_i32, %c0_i32_0 : i32, i32
  }
  func.func @transform_1(%arg0: i32) -> (i32, i32) {
    %c0_i32 = arith.constant 0 : i32
    %c0_i32_0 = arith.constant 0 : i32
    %c0_i32_1 = arith.constant 0 : i32
    return %c0_i32, %c0_i32_0 : i32, i32
  }
  func.func @transform_2(%arg0: i32) -> (i32, i32) {
    %c0_i32 = arith.constant 0 : i32
    %c0_i32_0 = arith.constant 0 : i32
    %c0_i32_1 = arith.constant 0 : i32
    return %c0_i32, %c0_i32_0 : i32, i32
  }
  func.func @transform_3(%arg0: i32) -> (i32, i32) {
    %c0_i32 = arith.constant 0 : i32
    %c0_i32_0 = arith.constant 0 : i32
    %c0_i32_1 = arith.constant 0 : i32
    return %c0_i32, %c0_i32_0 : i32, i32
  }
  func.func @transform_4(%arg0: i32) -> (i32, i32, i32) {
    %c0_i32 = arith.constant 0 : i32
    %c0_i32_0 = arith.constant 0 : i32
    %c0_i32_1 = arith.constant 0 : i32
    %c0_i32_2 = arith.constant 0 : i32
    return %c0_i32, %c0_i32_0, %c0_i32_1 : i32, i32, i32
  }
  func.func @transform_5(%arg0: i32) -> (i32, i32, i32) {
    %c0_i32 = arith.constant 0 : i32
    %c0_i32_0 = arith.constant 0 : i32
    %c0_i32_1 = arith.constant 0 : i32
    %c0_i32_2 = arith.constant 0 : i32
    return %c0_i32, %c0_i32_0, %c0_i32_1 : i32, i32, i32
  }
  func.func @transform_6(%arg0: i32) -> (i32, i32) {
    %c0_i32 = arith.constant 0 : i32
    %c0_i32_0 = arith.constant 0 : i32
    %c0_i32_1 = arith.constant 0 : i32
    return %c0_i32, %c0_i32_0 : i32, i32
  }
  func.func @transform_7(%arg0: i32) -> (i32, i32) {
    %c0_i32 = arith.constant 0 : i32
    %c0_i32_0 = arith.constant 0 : i32
    %c0_i32_1 = arith.constant 0 : i32
    return %c0_i32, %c0_i32_0 : i32, i32
  }
  func.func @transform_8(%arg0: i32) -> (i32, i32) {
    %c0_i32 = arith.constant 0 : i32
    %c0_i32_0 = arith.constant 0 : i32
    %c0_i32_1 = arith.constant 0 : i32
    return %c0_i32, %c0_i32_0 : i32, i32
  }
  func.func @transform_9(%arg0: i32) -> (i32, i32) {
    %c0_i32 = arith.constant 0 : i32
    %c0_i32_0 = arith.constant 0 : i32
    %c0_i32_1 = arith.constant 0 : i32
    return %c0_i32, %c0_i32_0 : i32, i32
  }
}

</mosaic_0001>

<bundles_post_ra>
// kernel: gcn_forward.1
= control target key start
LH: loop header
LB: loop body
LE: loop exit
PB: predicated region body
PF: predicated region fallthrough
CT: control target
= control target key end

     0   :  { %vm117_vm0 = vcmask 392192   ;;  %vm273_vm1 = vcmask 523264   ;;  %vm405_vm2 = vcmask 261120   ;;  %s5073_s3 = inlined_call_operand.vmem [shape: f32[48,32], index: 3, kind: input, shape index: {}]   ;;  %s5074_s2 = inlined_call_operand.vmem [shape: f32[64,32], index: 2, kind: input, shape index: {}]   ;;  %s5075_s0 = inlined_call_operand.vmem [shape: bf16[128,48], index: 0, kind: input, shape index: {}]   ;;  %s5076_s1 = inlined_call_operand.vmem [shape: bf16[96,64], index: 1, kind: input, shape index: {}]   ;;  %s5077_s5 = inlined_call_operand.vmem [shape: f32[2,32,32], index: 5, kind: input, shape index: {}]   ;;  %s5078_s4 = inlined_call_operand.vmem [shape: f32[2,32,32], index: 4, kind: input, shape index: {}]   ;;  %s5079_s7 = inlined_call_operand.vmem [shape: f32[64,32], index: 7, kind: input, shape index: {}]   ;;  %s5080_s6 = inlined_call_operand.vmem [shape: f32[64,32], index: 6, kind: input, shape index: {}]   ;;  %s5081_s9 = inlined_call_operand.vmem [shape: f32[144,32], index: 9, kind: output, shape index: {1}]   ;;  %s5082_s8 = inlined_call_operand.vmem [shape: f32[192,32], index: 8, kind: output, shape index: {0}]  }
   0x1   :  { %v68_v0 = vld [vmem:[%s5073_s3] sm:$0xff]  ;;  %v69_v1 = vld [vmem:[%s5073_s3 + $0x8] sm:$0xff]  ;;  %v70_v5 = vld [vmem:[%s5073_s3 + $0x10] sm:$0xff] }
   0x2   :  { %v60_v2 = vld [vmem:[%s5074_s2] sm:$0xff]  ;;  %v74_v3 = vpack.c.bf16 %v69_v1, %v68_v0  ;;  %v61_v4 = vld [vmem:[%s5074_s2 + $0x8] sm:$0xff]  ;;  %v71_v6 = vld [vmem:[%s5073_s3 + $0x18] sm:$0xff] }
   0x3   :  { %v239_v7 = vpack.c.bf16 %v61_v4, %v60_v2  ;;  %v75_v8 = vpack.c.bf16 %v71_v6, %v70_v5  ;;  %v62_v9 = vld [vmem:[%s5074_s2 + $0x10] sm:$0xff]  ;;  %v63_v10 = vld [vmem:[%s5074_s2 + $0x18] sm:$0xff]  ;;  %v72_v11 = vld [vmem:[%s5073_s3 + $0x20] sm:$0xff] }
   0x4   :  { %3271 = vmatprep.subr.bf16.mxu0 %v74_v3  ;;  %v240_v12 = vpack.c.bf16 %v63_v10, %v62_v9  ;;  %v73_v13 = vld [vmem:[%s5073_s3 + $0x28] sm:$0xff]  ;;  %v64_v14 = vld [vmem:[%s5074_s2 + $0x20] sm:$0xff]  ;;  %v66_v19 = vld [vmem:[%s5074_s2 + $0x30] sm:$0xff] }
   0x5   :  { %v65_v15 = vld [vmem:[%s5074_s2 + $0x28] sm:$0xff]  ;;  %3293 = vmatprep.subr.bf16.mxu1 %v239_v7  ;;  %3272 = vmatpush3.bf16.msra.mxu0 %v74_v3  ;;  %v4113_v16 = vld [vmem:[%s5075_s0] sm:$0xff]   ;;  %v76_v17 = vpack.c.bf16 %v73_v13, %v72_v11  ;;  %v67_v20 = vld [vmem:[%s5074_s2 + $0x38] sm:$0xff] }
   0x6   :  { %3294 = vmatpush3.bf16.msra.mxu1 %v239_v7  ;;  %3273 = vmatprep.subr.bf16.mxu0 %v75_v8  ;;  %v241_v18 = vpack.c.bf16 %v65_v15, %v64_v14  ;;  %v4126_v21 = vld [vmem:[%s5076_s1] sm:$0xff]   ;;  %v242_v22 = vpack.c.bf16 %v67_v20, %v66_v19  ;;  %v4133_v23 = vld [vmem:[%s5075_s0 + $0x8] sm:$0xff]   ;;  %v4138_v24 = vld [vmem:[%s5075_s0 + $0x10] sm:$0xff]  }
   0x7   :  { %3295 = vmatprep.subr.bf16.mxu1 %v240_v12  ;;  %3277 = vmatprep.mubr.msk.bf16.mxu0 %vm117_vm0, %v4113_v16  ;;  %v4145_v25 = vld [vmem:[%s5076_s1 + $0x8] sm:$0xff]   ;;  %v4152_v26 = vld [vmem:[%s5076_s1 + $0x10] sm:$0xff]   ;;  %v4157_v27 = vld [vmem:[%s5075_s0 + $0x18] sm:$0xff]  }
   0x8   :  { %3301 = vmatprep.mubr.msk.bf16.mxu1 %vm273_vm1, %v4126_v21  ;;  %v4164_v28 = vld [vmem:[%s5075_s0 + $0x20] sm:$0xff]   ;;  %v4173_v29 = vld [vmem:[%s5076_s1 + $0x18] sm:$0xff]   ;;  %v4185_v31 = vld [vmem:[%s5075_s0 + $0x28] sm:$0xff]  }
   0x9   :  { %3274 = vmatpush3.bf16.msra.mxu0 %v75_v8  ;;  %v4180_v30 = vld [vmem:[%s5076_s1 + $0x20] sm:$0xff]   ;;  %v4192_v32 = vld [vmem:[%s5075_s0 + $0x30] sm:$0xff]   ;;  %v4201_v33 = vld [vmem:[%s5076_s1 + $0x28] sm:$0xff]  }
   0xa   :  { %3296 = vmatpush3.bf16.msra.mxu1 %v240_v12  ;;  %3275 = vmatprep.subr.bf16.mxu0 %v76_v17  ;;  %v4208_v34 = vld [vmem:[%s5075_s0 + $0x38] sm:$0xff]   ;;  %v807_v35 = vld [vmem:[%s5077_s5] sm:$0xff]  ;;  %v808_v36 = vld [vmem:[%s5077_s5 + $0x8] sm:$0xff] }
   0xb   :  { %3297 = vmatprep.subr.bf16.mxu1 %v241_v18  ;;  %v3616_v37 = vpack.c.bf16 %v808_v36, %v807_v35  ;;  %v809_v38 = vld [vmem:[%s5077_s5 + $0x10] sm:$0xff]  ;;  %v810_v39 = vld [vmem:[%s5077_s5 + $0x18] sm:$0xff]  ;;  %v401_v41 = vld [vmem:[%s5078_s4] sm:$0xff] }
   0xc   :  { %v3620_v40 = vpack.c.bf16 %v810_v39, %v809_v38  ;;  %v402_v42 = vld [vmem:[%s5078_s4 + $0x8] sm:$0xff]  ;;  %v403_v44 = vld [vmem:[%s5078_s4 + $0x10] sm:$0xff]  ;;  %v404_v45 = vld [vmem:[%s5078_s4 + $0x18] sm:$0xff] }
   0xd   :  { %3276 = vmatpush3.bf16.msra.mxu0 %v76_v17  ;;  %v3608_v43 = vpack.c.bf16 %v402_v42, %v401_v41  ;;  %v3612_v46 = vpack.c.bf16 %v404_v45, %v403_v44 }
   0xe   :  { %3298 = vmatpush3.bf16.msra.mxu1 %v241_v18  ;;  %3617 = vmatprep.subr.bf16.mxu0 %v3616_v37 }
   0xf   :  { %3299 = vmatprep.subr.bf16.mxu1 %v242_v22 }
  0x10   :  { %3278 = vmatmul.mubr.msk.bf16.vlgmr.msra.gmra.mrb[0].mxu0 %vm117_vm0, %v4133_v23 }
  0x11   :  { %3281 = vmatprep.mubr.msk.bf16.mxu0 %vm117_vm0, %v4138_v24  ;;  %3619 = vmatpush3.bf16.msra.mxu0 %v3616_v37 }
  0x12   :  { %3300 = vmatpush3.bf16.msra.mxu1 %v242_v22  ;;  %3621 = vmatprep.subr.bf16.mxu0 %v3620_v40 }
  0x13   :  { %3609 = vmatprep.subr.bf16.mxu1 %v3608_v43 }
  0x15   :  { %3302 = vmatmul.mubr.msk.bf16.vlgmr.msra.gmra.mrb[0].mxu1 %vm273_vm1, %v4145_v25  ;;  %3623 = vmatpush3.bf16.msra.mxu0 %v3620_v40 }
  0x16   :  { %3305 = vmatprep.mubr.msk.bf16.mxu1 %vm273_vm1, %v4152_v26  ;;  %3611 = vmatpush3.bf16.msra.mxu1 %v3608_v43 }
  0x17   :  { %3613 = vmatprep.subr.bf16.mxu1 %v3612_v46 }
  0x18   :  { %3282 = vmatmul.mubr.msk.bf16.gmra.mrb[4].mxu0 %vm117_vm0, %v4157_v27 }
  0x19   :  { %3285 = vmatprep.mubr.msk.bf16.mxu0 %vm117_vm0, %v4164_v28 }
  0x1a   :  { %3615 = vmatpush3.bf16.msra.mxu1 %v3612_v46 }
  0x1d   :  { %3306 = vmatmul.mubr.msk.bf16.gmra.mrb[4].mxu1 %vm273_vm1, %v4173_v29 }
  0x1e   :  { %3309 = vmatprep.mubr.msk.bf16.mxu1 %vm273_vm1, %v4180_v30 }
  0x20   :  { %3286 = vmatmul.mubr.msk.bf16.gmra.mrb[8].mxu0 %vm117_vm0, %v4185_v31 }
  0x21   :  { %3289 = vmatprep.mubr.msk.bf16.mxu0 %vm117_vm0, %v4192_v32 }
  0x25   :  { %3310 = vmatmul.mubr.msk.bf16.gmra.mrb[8].mxu1 %vm273_vm1, %v4201_v33 }
  0x28   :  { %3290 = vmatmul.mubr.msk.bf16.gmra.mrb[12].mxu0 %vm117_vm0, %v4208_v34 }
  0xe3   :  { %v4238_v47 = vpop.f32.mrb[0].mxu0 }
  0xe4   :  { %v4240_v48 = vpop.f32.mrb[1].mxu0 }
  0xe5   :  { %v4242_v49 = vpop.f32.mrb[2].mxu0 }
  0xe6   :  { %v4244_v50 = vpop.f32.mrb[3].mxu0 }
  0xe8   :  { %v4246_v51 = vpop.f32.mrb[0].mxu1 }
  0xe9   :  { %v4248_v52 = vpop.f32.mrb[1].mxu1 }
  0xea   :  { %v4250_v53 = vpop.f32.mrb[2].mxu1 }
  0xeb   :  { %v4252_v54 = vpop.f32.mrb[4].mxu0  ;;  %v4254_v55 = vpop.f32.mrb[3].mxu1 }
  0xec   :  { %v4256_v56 = vpop.f32.mrb[5].mxu0 }
  0xed   :  { %v4258_v57 = vpop.f32.mrb[6].mxu0 }
  0xee   :  { %v4260_v58 = vpop.f32.mrb[7].mxu0 }
  0xf0   :  { %v4262_v59 = vpop.f32.mrb[4].mxu1 }
  0xf1   :  { %v381_v60 = vadd.f32 %v4262_v59, %v4248_v52  ;;  %v4266_v61 = vpop.f32.mrb[5].mxu1 }
  0xf2   :  { %v4268_v62 = vpop.f32.mrb[6].mxu1 }
  0xf3   :  { %v395_v63 = vmul.f32 0.5, %v381_v60  ;;  %v382_v0 = vadd.f32 %v4268_v62, %v4254_v55  ;;  %v4272_v1 = vpop.f32.mrb[8].mxu0  ;;  %v345_v2 = vpop.f32.mrb[7].mxu1 }
  0xf4   :  { %v375_v3 = vadd.f32 %v4272_v1, %v4238_v47  ;;  %v4276_v4 = vpop.f32.mrb[9].mxu0 }
  0xf5   :  { %v396_v5 = vmul.f32 0.5, %v382_v0  ;;  %v373_v6 = vadd.f32 %v4276_v4, %v4240_v48  ;;  %3365 = vmatprep.mubr.msk.f32.mxu0 %vm405_vm2, %v395_v63  ;;  %v4281_v7 = vpop.f32.mrb[10].mxu0 }
  0xf6   :  { %v376_v8 = vadd.f32 %v4281_v7, %v4242_v49  ;;  %v4285_v9 = vpop.f32.mrb[11].mxu0  ;;  %v389_v17 = vmul.f32 0.5, %v375_v3 }
  0xf7   :  { %v387_v10 = vmul.f32 0.5, %v373_v6  ;;  %v374_v11 = vadd.f32 %v4285_v9, %v4244_v50  ;;  %3366 = vmatmul.mubr.msk.f32.vlgmr.msra.gmra.mrb[16].mxu0 %vm405_vm2, %v396_v5 }
  0xf8   :  { %v3311_v12 = vpop.f32.mrb[8].mxu1  ;;  %v390_v40 = vmul.f32 0.5, %v376_v8 }
  0xf9   :  { %v388_v13 = vmul.f32 0.5, %v374_v11  ;;  %v385_v14 = vadd.f32 %v3311_v12, %v4266_v61  ;;  %v358_v15 = vpop.f32.mrb[9].mxu1  ;;  %3321 = vmatprep.mubr.msk.f32.mxu1 %vm405_vm2, %v387_v10 }
  0xfa   :  { %v383_v18 = vadd.f32 %v4246_v51, %v358_v15  ;;  %v3312_v19 = vpop.f32.mrb[10].mxu1 }
  0xfb   :  { %v386_v20 = vadd.f32 %v3312_v19, %v345_v2  ;;  %v361_v22 = vpop.f32.mrb[11].mxu1  ;;  %v3291_v35 = vpop.f32.mrb[12].mxu0  ;;  %3322 = vmatmul.mubr.msk.f32.vlgmr.msra.gmra.mrb[12].mxu1 %vm405_vm2, %v388_v13  ;;  %v399_v46 = vmul.f32 0.5, %v385_v14 }
  0xfc   :  { %v397_v36 = vmul.f32 0.5, %v383_v18  ;;  %v384_v37 = vadd.f32 %v4250_v53, %v361_v22  ;;  %v379_v38 = vadd.f32 %v3291_v35, %v4252_v54  ;;  %v224_v39 = vpop.f32.mrb[13].mxu0  ;;  %3324 = vmatprep.mubr.msk.f32.mxu1 %vm405_vm2, %v389_v17 }
  0xfd   :  { %v377_v41 = vadd.f32 %v224_v39, %v4256_v56  ;;  %v3292_v42 = vpop.f32.mrb[14].mxu0  ;;  %v400_v3 = vmul.f32 0.5, %v386_v20 }
  0xfe   :  { %v398_v43 = vmul.f32 0.5, %v384_v37  ;;  %v380_v44 = vadd.f32 %v3292_v42, %v4258_v57  ;;  %3368 = vmatprep.mubr.msk.f32.mxu0 %vm405_vm2, %v397_v36  ;;  %v227_v45 = vpop.f32.mrb[15].mxu0  ;;  %v393_v5 = vmul.f32 0.5, %v379_v38 }
  0xff   :  { %v391_v60 = vmul.f32 0.5, %v377_v41  ;;  %v378_v63 = vadd.f32 %v227_v45, %v4260_v58  ;;  %3325 = vmatmul.mubr.msk.f32.gmra.mrb[14].mxu1 %vm405_vm2, %v390_v40 }
 0x100   :  { %3369 = vmatmul.mubr.msk.f32.gmra.mrb[18].mxu0 %vm405_vm2, %v398_v43  ;;  %v394_v6 = vmul.f32 0.5, %v380_v44 }
 0x101   :  { %v392_v0 = vmul.f32 0.5, %v378_v63  ;;  %3371 = vmatprep.mubr.msk.f32.mxu0 %vm405_vm2, %v399_v46  ;;  %3327 = vmatprep.mubr.msk.f32.mxu1 %vm405_vm2, %v391_v60 }
 0x103   :  { %3328 = vmatmul.mubr.msk.f32.gmra.mrb[16].mxu1 %vm405_vm2, %v392_v0 }
 0x104   :  { %3372 = vmatmul.mubr.msk.f32.gmra.mrb[20].mxu0 %vm405_vm2, %v400_v3  ;;  %3330 = vmatprep.mubr.msk.f32.mxu1 %vm405_vm2, %v393_v5 }
 0x105   :  { %3374 = vmatprep.mubr.msk.f32.mxu0 %vm405_vm2, %v4248_v52 }
 0x107   :  { %3331 = vmatmul.mubr.msk.f32.gmra.mrb[18].mxu1 %vm405_vm2, %v394_v6 }
 0x108   :  { %3375 = vmatmul.mubr.msk.f32.gmra.mrb[22].mxu0 %vm405_vm2, %v4254_v55  ;;  %3333 = vmatprep.mubr.msk.f32.mxu1 %vm405_vm2, %v4240_v48 }
 0x109   :  { %3377 = vmatprep.mubr.msk.f32.mxu0 %vm405_vm2, %v4246_v51 }
 0x10b   :  { %3334 = vmatmul.mubr.msk.f32.gmra.mrb[20].mxu1 %vm405_vm2, %v4244_v50 }
 0x10c   :  { %3378 = vmatmul.mubr.msk.f32.gmra.mrb[24].mxu0 %vm405_vm2, %v4250_v53  ;;  %3336 = vmatprep.mubr.msk.f32.mxu1 %vm405_vm2, %v4238_v47 }
 0x10d   :  { %3380 = vmatprep.mubr.msk.f32.mxu0 %vm405_vm2, %v4266_v61 }
 0x10f   :  { %3337 = vmatmul.mubr.msk.f32.gmra.mrb[22].mxu1 %vm405_vm2, %v4242_v49 }
 0x110   :  { %3381 = vmatmul.mubr.msk.f32.gmra.mrb[26].mxu0 %vm405_vm2, %v345_v2  ;;  %3339 = vmatprep.mubr.msk.f32.mxu1 %vm405_vm2, %v4256_v56 }
 0x111   :  { %3383 = vmatprep.mubr.msk.f32.mxu0 %vm405_vm2, %v4262_v59 }
 0x113   :  { %3340 = vmatmul.mubr.msk.f32.gmra.mrb[24].mxu1 %vm405_vm2, %v4260_v58 }
 0x114   :  { %3384 = vmatmul.mubr.msk.f32.gmra.mrb[28].mxu0 %vm405_vm2, %v4268_v62  ;;  %3342 = vmatprep.mubr.msk.f32.mxu1 %vm405_vm2, %v4252_v54 }
 0x115   :  { %3386 = vmatprep.mubr.msk.f32.mxu0 %vm405_vm2, %v358_v15 }
 0x117   :  { %3343 = vmatmul.mubr.msk.f32.gmra.mrb[26].mxu1 %vm405_vm2, %v4258_v57 }
 0x118   :  { %3387 = vmatmul.mubr.msk.f32.gmra.mrb[30].mxu0 %vm405_vm2, %v361_v22  ;;  %3345 = vmatprep.mubr.msk.f32.mxu1 %vm405_vm2, %v4276_v4 }
 0x119   :  { %3389 = vmatprep.mubr.msk.f32.mxu0 %vm405_vm2, %v3311_v12 }
 0x11b   :  { %3346 = vmatmul.mubr.msk.f32.gmra.mrb[28].mxu1 %vm405_vm2, %v4285_v9 }
 0x11c   :  { %3390 = vmatmul.mubr.msk.f32.gmra.mrb[32].mxu0 %vm405_vm2, %v3312_v19  ;;  %3348 = vmatprep.mubr.msk.f32.mxu1 %vm405_vm2, %v4272_v1 }
 0x11d   :  { %3398 = vmatprep.mubr.msk.bf16.mxu0 %vm117_vm0, %v4113_v16 }
 0x11f   :  { %3349 = vmatmul.mubr.msk.f32.gmra.mrb[30].mxu1 %vm405_vm2, %v4281_v7 }
 0x120   :  { %3351 = vmatprep.mubr.msk.f32.mxu1 %vm405_vm2, %v224_v39 }
 0x123   :  { %3352 = vmatmul.mubr.msk.f32.gmra.mrb[32].mxu1 %vm405_vm2, %v227_v45 }
 0x124   :  { %3354 = vmatprep.mubr.msk.f32.mxu1 %vm405_vm2, %v3291_v35 }
 0x127   :  { %3355 = vmatmul.mubr.msk.f32.gmra.mrb[34].mxu1 %vm405_vm2, %v3292_v42 }
 0x128   :  { %3422 = vmatprep.mubr.msk.bf16.mxu1 %vm273_vm1, %v4126_v21 }
 0x1ca   :  { %v3367_v47 = vpop.f32.mrb[16].mxu0 }
 0x1cb   :  { %v2906_v48 = vmul.f32 -1.442695, %v3367_v47  ;;  %v931_v49 = vpop.f32.mrb[17].mxu0 }
 0x1cc   :  { %v2905_v50 = vmul.f32 -1.442695, %v931_v49 }
 0x1cd   :  { %3687 = vpow2.f32 %v2906_v48 }
 0x1ce   :  { %3689 = vpow2.f32 %v2905_v50  ;;  %v3323_v16 = vpop.f32.mrb[12].mxu1 }
 0x1cf   :  { %v2864_v51 = vmul.f32 -1.442695, %v3323_v16  ;;  %v544_v52 = vpop.f32.mrb[13].mxu1 }
 0x1d0   :  { %v2863_v53 = vmul.f32 -1.442695, %v544_v52 }
 0x1d1   :  { %3691 = vpow2.f32 %v2864_v51 }
 0x1d2   :  { %3693 = vpow2.f32 %v2863_v53  ;;  %v3326_v54 = vpop.f32.mrb[14].mxu1 }
 0x1d3   :  { %v2866_v55 = vmul.f32 -1.442695, %v3326_v54  ;;  %v3370_v56 = vpop.f32.mrb[18].mxu0  ;;  %v554_v57 = vpop.f32.mrb[15].mxu1 }
 0x1d4   :  { %v2908_v58 = vmul.f32 -1.442695, %v3370_v56  ;;  %v2865_v59 = vmul.f32 -1.442695, %v554_v57  ;;  %v941_v61 = vpop.f32.mrb[19].mxu0 }
 0x1d5   :  { %3695 = vpow2.f32 %v2866_v55  ;;  %v2907_v21 = vmul.f32 -1.442695, %v941_v61 }
 0x1d6   :  { %3697 = vpow2.f32 %v2908_v58  ;;  %v3329_v62 = vpop.f32.mrb[16].mxu1 }
 0x1d7   :  { %v3688_v1 = vpop.eup %3687  ;;  %3699 = vpow2.f32 %v2865_v59  ;;  %v2868_v2 = vmul.f32 -1.442695, %v3329_v62  ;;  %v3373_v4 = vpop.f32.mrb[20].mxu0 }
 0x1d8   :  { %v564_v7 = vpop.f32.mrb[17].mxu1  ;;  %v3690_v8 = vpop.eup %3689  ;;  %v1075_v9 = vadd.f32 1.0, %v3688_v1  ;;  %3701 = vpow2.f32 %v2907_v21  ;;  %v2910_v10 = vmul.f32 -1.442695, %v3373_v4 }
 0x1d9   :  { %v951_v11 = vpop.f32.mrb[21].mxu0  ;;  %v1074_v12 = vadd.f32 1.0, %v3690_v8  ;;  %3703 = vpow2.f32 %v2868_v2  ;;  %v2867_v13 = vmul.f32 -1.442695, %v564_v7 }
 0x1da   :  { %3705 = vrcp.f32 %v1075_v9  ;;  %v3332_v14 = vpop.f32.mrb[18].mxu1  ;;  %v2909_v22 = vmul.f32 -1.442695, %v951_v11 }
 0x1db   :  { %v3692_v15 = vpop.eup %3691  ;;  %3707 = vrcp.f32 %v1074_v12  ;;  %v4360_v17 = vpop.f32.mrb[22].mxu0  ;;  %v2870_v37 = vmul.f32 -1.442695, %v3332_v14 }
 0x1dc   :  { %v574_v18 = vpop.f32.mrb[19].mxu1  ;;  %v3694_v19 = vpop.eup %3693  ;;  %v736_v20 = vadd.f32 1.0, %v3692_v15  ;;  %3709 = vpow2.f32 %v2910_v10 }
 0x1dd   :  { %v4362_v35 = vpop.f32.mrb[23].mxu0  ;;  %v735_v36 = vadd.f32 1.0, %v3694_v19  ;;  %3711 = vpow2.f32 %v2867_v13  ;;  %v2869_v50 = vmul.f32 -1.442695, %v574_v18 }
 0x1de   :  { %3713 = vrcp.f32 %v736_v20  ;;  %v4364_v38 = vpop.f32.mrb[20].mxu1 }
 0x1df   :  { %v3696_v39 = vpop.eup %3695  ;;  %3715 = vrcp.f32 %v735_v36  ;;  %v4366_v40 = vpop.f32.mrb[24].mxu0 }
 0x1e0   :  { %v4368_v41 = vpop.f32.mrb[21].mxu1  ;;  %v3698_v42 = vpop.eup %3697  ;;  %v738_v43 = vadd.f32 1.0, %v3696_v39  ;;  %3717 = vpow2.f32 %v2909_v22 }
 0x1e1   :  { %v4370_v44 = vpop.f32.mrb[25].mxu0  ;;  %v3700_v45 = vpop.eup %3699  ;;  %v1077_v46 = vadd.f32 1.0, %v3698_v42  ;;  %3719 = vpow2.f32 %v2870_v37 }
 0x1e2   :  { %v3702_v60 = vpop.eup %3701  ;;  %3721 = vrcp.f32 %v738_v43  ;;  %v737_v63 = vadd.f32 1.0, %v3700_v45  ;;  %v4372_v0 = vpop.f32.mrb[22].mxu1 }
 0x1e3   :  { %v3704_v3 = vpop.eup %3703  ;;  %3723 = vrcp.f32 %v1077_v46  ;;  %v1076_v5 = vadd.f32 1.0, %v3702_v60  ;;  %v4374_v6 = vpop.f32.mrb[26].mxu0 }
 0x1e4   :  { %v4376_v47 = vpop.f32.mrb[23].mxu1  ;;  %v4378_v48 = vpop.eup %3705  ;;  %3725 = vrcp.f32 %v737_v63  ;;  %v740_v49 = vadd.f32 1.0, %v3704_v3 }
 0x1e5   :  { %v4380_v16 = vpop.f32.mrb[27].mxu0  ;;  %v4382_v51 = vpop.eup %3707  ;;  %3727 = vrcp.f32 %v1076_v5 }
 0x1e6   :  { %v3710_v52 = vpop.eup %3709  ;;  %v4384_v53 = vpop.f32.mrb[24].mxu1  ;;  %v1128_v54 = vpack.c.bf16 %v4378_v48, %v4382_v51  ;;  %3729 = vrcp.f32 %v740_v49 }
 0x1e7   :  { %v3712_v55 = vpop.eup %3711  ;;  %v1079_v56 = vadd.f32 1.0, %v3710_v52  ;;  %v4388_v57 = vpop.f32.mrb[28].mxu0  ;;  %3731 = vpow2.f32 %v2869_v50 }
 0x1e8   :  { %5088 = vst [vmem:[#allocation2_spill] sm:$0xff] %v4388_v57  ;;  %v4390_v58 = vpop.f32.mrb[25].mxu1  ;;  %v4392_v59 = vpop.eup %3713  ;;  %v739_v61 = vadd.f32 1.0, %v3712_v55  ;;  %3392 = vmatprep.subr.bf16.mxu0 %v1128_v54 }
 0x1e9   :  { %v4394_v21 = vpop.f32.mrb[29].mxu0  ;;  %v4396_v62 = vpop.eup %3715  ;;  %3393 = vmatpush3.bf16.msra.mxu0 %v1128_v54 }
 0x1ea   :  { %5089 = vst [vmem:[#allocation3_spill] sm:$0xff] %v4394_v21  ;;  %v3718_v1 = vpop.eup %3717  ;;  %3733 = vrcp.f32 %v739_v61  ;;  %v4398_v2 = vpop.f32.mrb[26].mxu1  ;;  %v1228_v4 = vpack.c.bf16 %v4392_v59, %v4396_v62 }
 0x1eb   :  { %5090 = vst [vmem:[#allocation4_spill] sm:$0xff] %v4398_v2  ;;  %v3720_v7 = vpop.eup %3719  ;;  %3735 = vrcp.f32 %v1079_v56  ;;  %v1078_v8 = vadd.f32 1.0, %v3718_v1  ;;  %v4402_v9 = vpop.f32.mrb[30].mxu0 }
 0x1ec   :  { %5091 = vst [vmem:[#allocation5_spill] sm:$0xff] %v4402_v9  ;;  %v4404_v10 = vpop.f32.mrb[27].mxu1  ;;  %v4406_v11 = vpop.eup %3721  ;;  %3414 = vmatprep.subr.bf16.mxu1 %v1228_v4  ;;  %v742_v19 = vadd.f32 1.0, %v3720_v7 }
 0x1ed   :  { %5092 = vst [vmem:[#allocation6_spill] sm:$0xff] %v4404_v10  ;;  %v4408_v12 = vpop.f32.mrb[31].mxu0  ;;  %v4410_v13 = vpop.eup %3723  ;;  %3737 = vrcp.f32 %v1078_v8  ;;  %3415 = vmatpush3.bf16.msra.mxu1 %v1228_v4 }
 0x1ee   :  { %5093 = vst [vmem:[#allocation7_spill] sm:$0xff] %v4408_v12  ;;  %v4412_v14 = vpop.eup %3725  ;;  %v4414_v15 = vpop.f32.mrb[28].mxu1  ;;  %3739 = vrcp.f32 %v742_v19 }
 0x1ef   :  { %5094 = vst [vmem:[#allocation8_spill] sm:$0xff] %v4414_v15  ;;  %v4416_v18 = vpop.eup %3727  ;;  %v4418_v20 = vpop.f32.mrb[32].mxu0  ;;  %v1229_v36 = vpack.c.bf16 %v4406_v11, %v4412_v14 }
 0x1f0   :  { %5095 = vst [vmem:[#allocation9_spill] sm:$0xff] %v4418_v20  ;;  %v4420_v22 = vpop.f32.mrb[29].mxu1  ;;  %v4424_v37 = vpop.f32.mrb[33].mxu0  ;;  %v1129_v39 = vpack.c.bf16 %v4410_v13, %v4416_v18 }
 0x1f1   :  { %5096 = vst [vmem:[#allocation10_spill] sm:$0xff] %v4420_v22  ;;  %5097 = vst [vmem:[#allocation11_spill] sm:$0xff] %v4424_v37  ;;  %v4428_v42 = vpop.eup %3729  ;;  %3416 = vmatprep.subr.bf16.mxu1 %v1229_v36 }
 0x1f2   :  { %5098 = vst [vmem:[#allocation12_spill] sm:$0xff] %v4428_v42  ;;  %v3732_v43 = vpop.eup %3731  ;;  %3394 = vmatprep.subr.bf16.mxu0 %v1129_v39  ;;  %3417 = vmatpush3.bf16.msra.mxu1 %v1229_v36  ;;  %v4430_v45 = vpop.f32.mrb[30].mxu1 }
 0x1f3   :  { %5099 = vst [vmem:[#allocation13_spill] sm:$0xff] %v4430_v45  ;;  %v741_v46 = vadd.f32 1.0, %v3732_v43  ;;  %3395 = vmatpush3.bf16.msra.mxu0 %v1129_v39  ;;  %v4432_v60 = vpop.f32.mrb[31].mxu1 }
 0x1f4   :  { %5100 = vst [vmem:[#allocation14_spill] sm:$0xff] %v4432_v60  ;;  %v4434_v63 = vpop.eup %3733 }
 0x1f5   :  { %v4436_v3 = vpop.eup %3735  ;;  %3741 = vrcp.f32 %v741_v46  ;;  %v1230_v5 = vpack.c.bf16 %v4428_v42, %v4434_v63 }
 0x1f6   :  { %5101 = vst [vmem:[#allocation15_spill] sm:$0xff] %v4436_v3  ;;  %v4440_v49 = vpop.f32.mrb[32].mxu1 }
 0x1f7   :  { %5102 = vst [vmem:[#allocation16_spill] sm:$0xff] %v4440_v49  ;;  %v4442_v50 = vpop.eup %3737  ;;  %3418 = vmatprep.subr.bf16.mxu1 %v1230_v5  ;;  %v4444_v52 = vpop.f32.mrb[33].mxu1 }
 0x1f8   :  { %5103 = vst [vmem:[#allocation17_spill] sm:$0xff] %v4442_v50  ;;  %5104 = vst [vmem:[#allocation18_spill] sm:$0xff] %v4444_v52  ;;  %v1130_v54 = vpack.c.bf16 %v4436_v3, %v4442_v50  ;;  %3419 = vmatpush3.bf16.msra.mxu1 %v1230_v5  ;;  %v4452_v61 = vpop.eup %3739 }
 0x1f9   :  { %5107 = vst [vmem:[#allocation21_spill] sm:$0xff] %v4452_v61 }
 0x1fa   :  { %3396 = vmatprep.subr.bf16.mxu0 %v1130_v54  ;;  %v4448_v55 = vpop.f32.mrb[34].mxu1 }
 0x1fb   :  { %5105 = vst [vmem:[#allocation19_spill] sm:$0xff] %v4448_v55  ;;  %3397 = vmatpush3.bf16.msra.mxu0 %v1130_v54  ;;  %v4450_v56 = vpop.f32.mrb[35].mxu1 }
 0x1fc   :  { %5106 = vst [vmem:[#allocation20_spill] sm:$0xff] %v4450_v56 }
 0x1fe   :  { %3399 = vmatmul.mubr.msk.bf16.vlgmr.msra.gmra.mrb[36].mxu0 %vm117_vm0, %v4133_v23  ;;  %v2989_v23 = vld [vmem:[%s5077_s5 + $0x20] sm:$0xff] }
 0x1ff   :  { %v4456_v1 = vpop.eup %3741  ;;  %3402 = vmatprep.mubr.msk.bf16.mxu0 %vm117_vm0, %v4138_v24  ;;  %v2990_v24 = vld [vmem:[%s5077_s5 + $0x28] sm:$0xff] }
 0x200   :  { %5108 = vst [vmem:[#allocation22_spill] sm:$0xff] %v4456_v1  ;;  %v1231_v4 = vpack.c.bf16 %v4452_v61, %v4456_v1 }
 0x202   :  { %3420 = vmatprep.subr.bf16.mxu1 %v1231_v4 }
 0x203   :  { %3421 = vmatpush3.bf16.msra.mxu1 %v1231_v4 }
 0x206   :  { %3423 = vmatmul.mubr.msk.bf16.vlgmr.msra.gmra.mrb[36].mxu1 %vm273_vm1, %v4145_v25  ;;  %3403 = vmatmul.mubr.msk.bf16.gmra.mrb[40].mxu0 %vm117_vm0, %v4157_v27  ;;  %v3632_v25 = vpack.c.bf16 %v2990_v24, %v2989_v23  ;;  %v2992_v27 = vld [vmem:[%s5077_s5 + $0x38] sm:$0xff] }
 0x207   :  { %3426 = vmatprep.mubr.msk.bf16.mxu1 %vm273_vm1, %v4152_v26  ;;  %3406 = vmatprep.mubr.msk.bf16.mxu0 %vm117_vm0, %v4164_v28  ;;  %v2991_v26 = vld [vmem:[%s5077_s5 + $0x30] sm:$0xff]  ;;  %v2937_v28 = vld [vmem:[%s5078_s4 + $0x20] sm:$0xff] }
 0x208   :  { %3633 = vmatprep.subr.bf16.mxu1 %v3632_v25 }
 0x209   :  { %3635 = vmatpush3.bf16.msra.mxu1 %v3632_v25 }
 0x20e   :  { %3427 = vmatmul.mubr.msk.bf16.gmra.mrb[40].mxu1 %vm273_vm1, %v4173_v29  ;;  %3407 = vmatmul.mubr.msk.bf16.gmra.mrb[44].mxu0 %vm117_vm0, %v4185_v31  ;;  %v3636_v29 = vpack.c.bf16 %v2992_v27, %v2991_v26 }
 0x20f   :  { %3430 = vmatprep.mubr.msk.bf16.mxu1 %vm273_vm1, %v4180_v30  ;;  %3410 = vmatprep.mubr.msk.bf16.mxu0 %vm117_vm0, %v4192_v32  ;;  %v2938_v30 = vld [vmem:[%s5078_s4 + $0x28] sm:$0xff]  ;;  %v2939_v32 = vld [vmem:[%s5078_s4 + $0x30] sm:$0xff] }
 0x210   :  { %v3624_v31 = vpack.c.bf16 %v2938_v30, %v2937_v28  ;;  %3637 = vmatprep.subr.bf16.mxu1 %v3636_v29 }
 0x211   :  { %3639 = vmatpush3.bf16.msra.mxu1 %v3636_v29 }
 0x212   :  { %3625 = vmatprep.subr.bf16.mxu0 %v3624_v31 }
 0x213   :  { %3627 = vmatpush3.bf16.msra.mxu0 %v3624_v31 }
 0x216   :  { %3431 = vmatmul.mubr.msk.bf16.gmra.mrb[44].mxu1 %vm273_vm1, %v4201_v33  ;;  %3411 = vmatmul.mubr.msk.bf16.gmra.mrb[48].mxu0 %vm117_vm0, %v4208_v34  ;;  %v2940_v33 = vld [vmem:[%s5078_s4 + $0x38] sm:$0xff] }
 0x217   :  { %v3628_v34 = vpack.c.bf16 %v2940_v33, %v2939_v32 }
 0x219   :  { %3629 = vmatprep.subr.bf16.mxu0 %v3628_v34 }
 0x21a   :  { %3631 = vmatpush3.bf16.msra.mxu0 %v3628_v34 }
 0x2d1   :  { %v4506_v7 = vpop.f32.mrb[36].mxu0 }
 0x2d2   :  { %v4508_v8 = vpop.f32.mrb[37].mxu0 }
 0x2d3   :  { %v4510_v19 = vpop.f32.mrb[38].mxu0 }
 0x2d4   :  { %v4512_v36 = vpop.f32.mrb[39].mxu0 }
 0x2d9   :  { %v4514_v39 = vpop.f32.mrb[36].mxu1  ;;  %v4516_v43 = vpop.f32.mrb[40].mxu0 }
 0x2da   :  { %v4518_v46 = vpop.f32.mrb[37].mxu1  ;;  %v4520_v5 = vpop.f32.mrb[41].mxu0 }
 0x2db   :  { %v4522_v54 = vpop.f32.mrb[38].mxu1  ;;  %v4524_v4 = vpop.f32.mrb[42].mxu0 }
 0x2dc   :  { %v1269_v23 = vpop.f32.mrb[39].mxu1  ;;  %v4526_v24 = vpop.f32.mrb[43].mxu0 }
 0x2e1   :  { %v4528_v25 = vpop.f32.mrb[40].mxu1  ;;  %v4530_v26 = vpop.f32.mrb[44].mxu0 }
 0x2e2   :  { %v1321_v27 = vadd.f32 %v4528_v25, %v4518_v46  ;;  %v4534_v28 = vpop.f32.mrb[41].mxu1  ;;  %v1315_v29 = vadd.f32 %v4530_v26, %v4506_v7  ;;  %v4538_v30 = vpop.f32.mrb[45].mxu0 }
 0x2e3   :  { %v4540_v31 = vpop.f32.mrb[42].mxu1  ;;  %v1313_v32 = vadd.f32 %v4538_v30, %v4508_v8  ;;  %v4544_v33 = vpop.f32.mrb[46].mxu0 }
 0x2e4   :  { %v1335_v34 = vmul.f32 0.5, %v1321_v27  ;;  %v1322_v55 = vadd.f32 %v4540_v31, %v1269_v23  ;;  %v1316_v56 = vadd.f32 %v4544_v33, %v4510_v19  ;;  %v4549_v52 = vpop.f32.mrb[47].mxu0  ;;  %v1285_v49 = vpop.f32.mrb[43].mxu1  ;;  %v1329_v9 = vmul.f32 0.5, %v1315_v29 }
 0x2e5   :  { %v1327_v20 = vmul.f32 0.5, %v1313_v32  ;;  %v1314_v60 = vadd.f32 %v4549_v52, %v4512_v36 }
 0x2e6   :  { %v1336_v45 = vmul.f32 0.5, %v1322_v55  ;;  %3486 = vmatprep.mubr.msk.f32.mxu1 %vm405_vm2, %v1335_v34  ;;  %v1330_v55 = vmul.f32 0.5, %v1316_v56 }
 0x2e7   :  { %v1328_v37 = vmul.f32 0.5, %v1314_v60  ;;  %3442 = vmatprep.mubr.msk.f32.mxu0 %vm405_vm2, %v1327_v20 }
 0x2e8   :  { %3487 = vmatmul.mubr.msk.f32.vlgmr.msra.gmra.mrb[48].mxu1 %vm405_vm2, %v1336_v45 }
 0x2e9   :  { %v3432_v27 = vpop.f32.mrb[44].mxu1  ;;  %v3412_v12 = vpop.f32.mrb[48].mxu0  ;;  %3443 = vmatmul.mubr.msk.f32.vlgmr.msra.gmra.mrb[34].mxu0 %vm405_vm2, %v1328_v37 }
 0x2ea   :  { %v1325_v22 = vadd.f32 %v3432_v27, %v4534_v28  ;;  %v1298_v15 = vpop.f32.mrb[45].mxu1  ;;  %v1319_v32 = vadd.f32 %v3412_v12, %v4516_v43  ;;  %v1213_v3 = vpop.f32.mrb[49].mxu0  ;;  %3445 = vmatprep.mubr.msk.f32.mxu0 %vm405_vm2, %v1329_v9 }
 0x2eb   :  { %v1323_v60 = vadd.f32 %v4514_v39, %v1298_v15  ;;  %v3433_v34 = vpop.f32.mrb[46].mxu1  ;;  %v1317_v20 = vadd.f32 %v1213_v3, %v4520_v5  ;;  %v3413_v29 = vpop.f32.mrb[50].mxu0 }
 0x2ec   :  { %v1326_v45 = vadd.f32 %v3433_v34, %v1285_v49  ;;  %v1301_v50 = vpop.f32.mrb[47].mxu1  ;;  %v1320_v21 = vadd.f32 %v3413_v29, %v4524_v4  ;;  %v1216_v37 = vpop.f32.mrb[51].mxu0  ;;  %v1339_v57 = vmul.f32 0.5, %v1325_v22  ;;  %v1333_v42 = vmul.f32 0.5, %v1319_v32  ;;  %v2280_v22 = vld [vmem:[%s5080_s6 + $0x8] sm:$0xff] }
 0x2ed   :  { %v1337_v61 = vmul.f32 0.5, %v1323_v60  ;;  %v1324_v2 = vadd.f32 %v4522_v54, %v1301_v50  ;;  %v1331_v1 = vmul.f32 0.5, %v1317_v20  ;;  %v1318_v10 = vadd.f32 %v1216_v37, %v4526_v24  ;;  %3446 = vmatmul.mubr.msk.f32.gmra.mrb[52].mxu0 %vm405_vm2, %v1330_v55 }
 0x2ee   :  { %v1340_v60 = vmul.f32 0.5, %v1326_v45  ;;  %v1334_v20 = vmul.f32 0.5, %v1320_v21  ;;  %v2569_v21 = vld [vmem:[%s5079_s7 + $0x8] sm:$0xff] }
 0x2ef   :  { %v1338_v9 = vmul.f32 0.5, %v1324_v2  ;;  %v1332_v56 = vmul.f32 0.5, %v1318_v10  ;;  %3489 = vmatprep.mubr.msk.f32.mxu1 %vm405_vm2, %v1337_v61  ;;  %3448 = vmatprep.mubr.msk.f32.mxu0 %vm405_vm2, %v1331_v1  ;;  %v2570_v2 = vld [vmem:[%s5079_s7 + $0x10] sm:$0xff]  ;;  %v2282_v61 = vld [vmem:[%s5080_s6 + $0x18] sm:$0xff] }
 0x2f1   :  { %3490 = vmatmul.mubr.msk.f32.gmra.mrb[50].mxu1 %vm405_vm2, %v1338_v9  ;;  %3449 = vmatmul.mubr.msk.f32.gmra.mrb[54].mxu0 %vm405_vm2, %v1332_v56 }
 0x2f2   :  { %3492 = vmatprep.mubr.msk.f32.mxu1 %vm405_vm2, %v1339_v57  ;;  %3451 = vmatprep.mubr.msk.f32.mxu0 %vm405_vm2, %v1333_v42  ;;  %v2568_v57 = vld [vmem:[%s5079_s7] sm:$0xff] }
 0x2f3   :  { %v3656_v10 = vpack.c.bf16 %v2569_v21, %v2568_v57  ;;  %v2575_v57 = vld [vmem:[%s5079_s7 + $0x38] sm:$0xff] }
 0x2f5   :  { %3493 = vmatmul.mubr.msk.f32.gmra.mrb[52].mxu1 %vm405_vm2, %v1340_v60  ;;  %3452 = vmatmul.mubr.msk.f32.gmra.mrb[56].mxu0 %vm405_vm2, %v1334_v20  ;;  %v2574_v20 = vld [vmem:[%s5079_s7 + $0x30] sm:$0xff] }
 0x2f6   :  { %3495 = vmatprep.mubr.msk.f32.mxu1 %vm405_vm2, %v4518_v46  ;;  %3454 = vmatprep.mubr.msk.f32.mxu0 %vm405_vm2, %v4508_v8 }
 0x2f7   :  { %3657 = vmatprep.subr.bf16.mxu0 %v3656_v10 }
 0x2f8   :  { %3659 = vmatpush3.bf16.msra.mxu0 %v3656_v10 }
 0x2f9   :  { %3496 = vmatmul.mubr.msk.f32.gmra.mrb[54].mxu1 %vm405_vm2, %v1269_v23  ;;  %3455 = vmatmul.mubr.msk.f32.gmra.mrb[58].mxu0 %vm405_vm2, %v4512_v36 }
 0x2fa   :  { %3498 = vmatprep.mubr.msk.f32.mxu1 %vm405_vm2, %v4514_v39  ;;  %3457 = vmatprep.mubr.msk.f32.mxu0 %vm405_vm2, %v4506_v7 }
 0x2fd   :  { %3499 = vmatmul.mubr.msk.f32.gmra.mrb[56].mxu1 %vm405_vm2, %v4522_v54  ;;  %3458 = vmatmul.mubr.msk.f32.gmra.mrb[60].mxu0 %vm405_vm2, %v4510_v19 }
 0x2fe   :  { %3501 = vmatprep.mubr.msk.f32.mxu1 %vm405_vm2, %v4534_v28  ;;  %3460 = vmatprep.mubr.msk.f32.mxu0 %vm405_vm2, %v4520_v5 }
 0x301   :  { %3502 = vmatmul.mubr.msk.f32.gmra.mrb[58].mxu1 %vm405_vm2, %v1285_v49  ;;  %3461 = vmatmul.mubr.msk.f32.gmra.mrb[62].mxu0 %vm405_vm2, %v4526_v24  ;;  %v2572_v49 = vld [vmem:[%s5079_s7 + $0x20] sm:$0xff] }
 0x302   :  { %3504 = vmatprep.mubr.msk.f32.mxu1 %vm405_vm2, %v4528_v25  ;;  %3463 = vmatprep.mubr.msk.f32.mxu0 %vm405_vm2, %v4516_v43 }
 0x305   :  { %3505 = vmatmul.mubr.msk.f32.gmra.mrb[60].mxu1 %vm405_vm2, %v4540_v31  ;;  %3464 = vmatmul.mubr.msk.f32.gmra.mrb[64].mxu0 %vm405_vm2, %v4524_v4 }
 0x306   :  { %3507 = vmatprep.mubr.msk.f32.mxu1 %vm405_vm2, %v1298_v15  ;;  %3466 = vmatprep.mubr.msk.f32.mxu0 %vm405_vm2, %v4538_v30  ;;  %v2571_v15 = vld [vmem:[%s5079_s7 + $0x18] sm:$0xff] }
 0x307   :  { %v3660_v42 = vpack.c.bf16 %v2571_v15, %v2570_v2  ;;  %v3668_v15 = vpack.c.bf16 %v2575_v57, %v2574_v20 }
 0x309   :  { %3508 = vmatmul.mubr.msk.f32.gmra.mrb[62].mxu1 %vm405_vm2, %v1301_v50  ;;  %3467 = vmatmul.mubr.msk.f32.gmra.mrb[66].mxu0 %vm405_vm2, %v4549_v52  ;;  %v2573_v50 = vld [vmem:[%s5079_s7 + $0x28] sm:$0xff]  ;;  %v2281_v52 = vld [vmem:[%s5080_s6 + $0x10] sm:$0xff] }
 0x30a   :  { %3510 = vmatprep.mubr.msk.f32.mxu1 %vm405_vm2, %v3432_v27  ;;  %3469 = vmatprep.mubr.msk.f32.mxu0 %vm405_vm2, %v4530_v26  ;;  %v3644_v1 = vpack.c.bf16 %v2282_v61, %v2281_v52  ;;  %v3664_v7 = vpack.c.bf16 %v2573_v50, %v2572_v49 }
 0x30b   :  { %3661 = vmatprep.subr.bf16.mxu0 %v3660_v42 }
 0x30c   :  { %3663 = vmatpush3.bf16.msra.mxu0 %v3660_v42 }
 0x30d   :  { %3511 = vmatmul.mubr.msk.f32.gmra.mrb[64].mxu1 %vm405_vm2, %v3433_v34  ;;  %3470 = vmatmul.mubr.msk.f32.gmra.mrb[68].mxu0 %vm405_vm2, %v4544_v33 }
 0x30e   :  { %3472 = vmatprep.mubr.msk.f32.mxu0 %vm405_vm2, %v1213_v3  ;;  %3665 = vmatprep.subr.bf16.mxu0 %v3664_v7 }
 0x310   :  { %3667 = vmatpush3.bf16.msra.mxu0 %v3664_v7 }
 0x311   :  { %3473 = vmatmul.mubr.msk.f32.gmra.mrb[70].mxu0 %vm405_vm2, %v1216_v37  ;;  %3669 = vmatprep.subr.bf16.mxu0 %v3668_v15 }
 0x312   :  { %3475 = vmatprep.mubr.msk.f32.mxu0 %vm405_vm2, %v3412_v12  ;;  %v2279_v12 = vld [vmem:[%s5080_s6] sm:$0xff] }
 0x313   :  { %v3640_v3 = vpack.c.bf16 %v2280_v22, %v2279_v12  ;;  %v2283_v12 = vld [vmem:[%s5080_s6 + $0x20] sm:$0xff]  ;;  %v2284_v22 = vld [vmem:[%s5080_s6 + $0x28] sm:$0xff] }
 0x314   :  { %v3648_v50 = vpack.c.bf16 %v2284_v22, %v2283_v12  ;;  %3671 = vmatpush3.bf16.msra.mxu0 %v3668_v15 }
 0x315   :  { %3476 = vmatmul.mubr.msk.f32.gmra.mrb[72].mxu0 %vm405_vm2, %v3413_v29  ;;  %3641 = vmatprep.subr.bf16.mxu1 %v3640_v3 }
 0x316   :  { %3643 = vmatpush3.bf16.msra.mxu1 %v3640_v3 }
 0x317   :  { %3645 = vmatprep.subr.bf16.mxu1 %v3644_v1 }
 0x31a   :  { %3647 = vmatpush3.bf16.msra.mxu1 %v3644_v1 }
 0x31b   :  { %3649 = vmatprep.subr.bf16.mxu1 %v3648_v50 }
 0x31e   :  { %3651 = vmatpush3.bf16.msra.mxu1 %v3648_v50 }
 0x3bb   :  { %v3488_v8 = vpop.f32.mrb[48].mxu1 }
 0x3bc   :  { %v3012_v19 = vmul.f32 -1.442695, %v3488_v8  ;;  %v1872_v36 = vpop.f32.mrb[49].mxu1  ;;  %v3444_v39 = vpop.f32.mrb[34].mxu0 }
 0x3bd   :  { %v3011_v43 = vmul.f32 -1.442695, %v1872_v36  ;;  %v2966_v46 = vmul.f32 -1.442695, %v3444_v39  ;;  %v1484_v5 = vpop.f32.mrb[35].mxu0  ;;  %v2285_v36 = vld [vmem:[%s5080_s6 + $0x30] sm:$0xff] }
 0x3be   :  { %3743 = vpow2.f32 %v3012_v19  ;;  %v2965_v54 = vmul.f32 -1.442695, %v1484_v5  ;;  %v2286_v39 = vld [vmem:[%s5080_s6 + $0x38] sm:$0xff]  ;;  %s4023_s6 = smov 32  }
 0x3bf   :  { %3745 = vpow2.f32 %v3011_v43 }
 0x3c0   :  { %3747 = vpow2.f32 %v2966_v46  ;;  %v3447_v4 = vpop.f32.mrb[52].mxu0 }
 0x3c1   :  { %3749 = vpow2.f32 %v2965_v54  ;;  %v2968_v23 = vmul.f32 -1.442695, %v3447_v4  ;;  %v1494_v24 = vpop.f32.mrb[53].mxu0  ;;  %v3652_v54 = vpack.c.bf16 %v2286_v39, %v2285_v36 }
 0x3c2   :  { %v2967_v25 = vmul.f32 -1.442695, %v1494_v24 }
 0x3c3   :  { %3751 = vpow2.f32 %v2968_v23  ;;  %3653 = vmatprep.subr.bf16.mxu1 %v3652_v54 }
 0x3c4   :  { %v3450_v26 = vpop.f32.mrb[54].mxu0  ;;  %v3491_v28 = vpop.f32.mrb[50].mxu1  ;;  %3753 = vpow2.f32 %v2967_v25  ;;  %3655 = vmatpush3.bf16.msra.mxu1 %v3652_v54 }
 0x3c5   :  { %v3014_v30 = vmul.f32 -1.442695, %v3491_v28  ;;  %v1504_v31 = vpop.f32.mrb[55].mxu0  ;;  %v1882_v33 = vpop.f32.mrb[51].mxu1  ;;  %v2970_v8 = vmul.f32 -1.442695, %v3450_v26 }
 0x3c6   :  { %v2969_v27 = vmul.f32 -1.442695, %v1504_v31  ;;  %v3013_v56 = vmul.f32 -1.442695, %v1882_v33 }
 0x3c7   :  { %3755 = vpow2.f32 %v3014_v30 }
 0x3c8   :  { %v3744_v32 = vpop.eup %3743  ;;  %v3494_v55 = vpop.f32.mrb[52].mxu1  ;;  %3757 = vpow2.f32 %v2969_v27 }
 0x3c9   :  { %v3453_v34 = vpop.f32.mrb[56].mxu0  ;;  %v3746_v29 = vpop.eup %3745  ;;  %v2016_v45 = vadd.f32 1.0, %v3744_v32  ;;  %v3016_v43 = vmul.f32 -1.442695, %v3494_v55 }
 0x3ca   :  { %v1892_v37 = vpop.f32.mrb[53].mxu1  ;;  %v3748_v9 = vpop.eup %3747  ;;  %v2015_v2 = vadd.f32 1.0, %v3746_v29  ;;  %v2972_v19 = vmul.f32 -1.442695, %v3453_v34 }
 0x3cb   :  { %v1514_v60 = vpop.f32.mrb[57].mxu0  ;;  %v3750_v21 = vpop.eup %3749  ;;  %3759 = vrcp.f32 %v2016_v45  ;;  %v1676_v10 = vadd.f32 1.0, %v3748_v9  ;;  %v3015_v31 = vmul.f32 -1.442695, %v1892_v37 }
 0x3cc   :  { %v1675_v42 = vadd.f32 1.0, %v3750_v21  ;;  %v3497_v3 = vpop.f32.mrb[54].mxu1  ;;  %v3456_v49 = vpop.f32.mrb[58].mxu0  ;;  %v2971_v29 = vmul.f32 -1.442695, %v1514_v60 }
 0x3cd   :  { %v3752_v52 = vpop.eup %3751  ;;  %3761 = vrcp.f32 %v1676_v10  ;;  %v1902_v61 = vpop.f32.mrb[55].mxu1  ;;  %v3018_v37 = vmul.f32 -1.442695, %v3497_v3 }
 0x3ce   :  { %v1524_v1 = vpop.f32.mrb[59].mxu0  ;;  %v1678_v7 = vadd.f32 1.0, %v3752_v52  ;;  %3763 = vpow2.f32 %v3013_v56  ;;  %v3754_v4 = vpop.eup %3753  ;;  %v2974_v56 = vmul.f32 -1.442695, %v3456_v49  ;;  %v3017_v60 = vmul.f32 -1.442695, %v1902_v61 }
 0x3cf   :  { %3765 = vrcp.f32 %v2015_v2  ;;  %v1677_v55 = vadd.f32 1.0, %v3754_v4  ;;  %v2973_v22 = vmul.f32 -1.442695, %v1524_v1 }
 0x3d0   :  { %3767 = vrcp.f32 %v1675_v42  ;;  %v4668_v46 = vpop.f32.mrb[56].mxu1  ;;  %v3459_v5 = vpop.f32.mrb[60].mxu0 }
 0x3d1   :  { %3769 = vrcp.f32 %v1678_v7  ;;  %v4670_v23 = vpop.f32.mrb[57].mxu1  ;;  %v4672_v24 = vpop.f32.mrb[61].mxu0  ;;  %v2976_v1 = vmul.f32 -1.442695, %v3459_v5  ;;  %v3020_v54 = vmul.f32 -1.442695, %v4668_v46 }
 0x3d2   :  { %v3756_v25 = vpop.eup %3755  ;;  %3771 = vpow2.f32 %v2970_v8 }
 0x3d3   :  { %v3758_v26 = vpop.eup %3757  ;;  %v2018_v28 = vadd.f32 1.0, %v3756_v25  ;;  %3773 = vpow2.f32 %v2972_v19 }
 0x3d4   :  { %v1679_v30 = vadd.f32 1.0, %v3758_v26  ;;  %3775 = vpow2.f32 %v3016_v43  ;;  %v4674_v33 = vpop.f32.mrb[58].mxu1  ;;  %v4676_v27 = vpop.f32.mrb[62].mxu0 }
 0x3d5   :  { %v3760_v32 = vpop.eup %3759  ;;  %v4678_v34 = vpop.f32.mrb[59].mxu1 }
 0x3d6   :  { %3777 = vrcp.f32 %v1679_v30  ;;  %2209 = vrot.lane.b32.xlu1 %v3760_v32, %s4023_s6  ;;  %v4681_v45 = vpop.f32.mrb[63].mxu0  ;;  %v2975_v32 = vmul.f32 -1.442695, %v4672_v24  ;;  %v3022_v24 = vmul.f32 -1.442695, %v4674_v33 }
 0x3d7   :  { %v3762_v9 = vpop.eup %3761  ;;  %3779 = vrcp.f32 %v2018_v28 }
 0x3d8   :  { %v3764_v20 = vpop.eup %3763  ;;  %3781 = vpow2.f32 %v3015_v31  ;;  %v4683_v57 = vpop.f32.mrb[60].mxu1  ;;  %2095 = vrot.lane.b32.xlu0 %v3762_v9, %s4023_s6 }
 0x3d9   :  { %v4686_v21 = vpop.f32.mrb[64].mxu0  ;;  %v3766_v2 = vpop.eup %3765  ;;  %3783 = vrcp.f32 %v1677_v55  ;;  %v2017_v3 = vadd.f32 1.0, %v3764_v20 }
 0x3da   :  { %v4688_v10 = vpop.f32.mrb[61].mxu1  ;;  %v4690_v15 = vpop.f32.mrb[65].mxu0  ;;  %3785 = vpow2.f32 %v2971_v29  ;;  %2207 = vrot.lane.b32.xlu1 %v3766_v2, %s4023_s6  ;;  %v3019_v29 = vmul.f32 -1.442695, %v4670_v23  ;;  %v2978_v23 = vmul.f32 -1.442695, %v4676_v27 }
 0x3db   :  { %v3768_v12 = vpop.eup %3767  ;;  %3787 = vpow2.f32 %v2974_v56 }
 0x3dc   :  { %v3770_v42 = vpop.eup %3769  ;;  %3789 = vpow2.f32 %v3018_v37  ;;  %v4693_v50 = vpop.f32.mrb[62].mxu1  ;;  %2093 = vrot.lane.b32.xlu0 %v3768_v12, %s4023_s6 }
 0x3dd   :  { %v3772_v49 = vpop.eup %3771  ;;  %v4696_v52 = vpop.f32.mrb[66].mxu0  ;;  %3791 = vpow2.f32 %v3017_v60 }
 0x3de   :  { %v3774_v61 = vpop.eup %3773  ;;  %v4698_v7 = vpop.f32.mrb[63].mxu1  ;;  %3793 = vpow2.f32 %v2973_v22  ;;  %2099 = vrot.lane.b32.xlu1 %v3770_v42, %s4023_s6  ;;  %v1680_v39 = vadd.f32 1.0, %v3772_v49 }
 0x3df   :  { %v3776_v8 = vpop.eup %3775  ;;  %v1682_v19 = vadd.f32 1.0, %v3774_v61  ;;  %v4701_v36 = vpop.f32.mrb[67].mxu0  ;;  %3795 = vrcp.f32 %v2017_v3 }
 0x3e0   :  { %v3778_v43 = vpop.eup %3777  ;;  %v4704_v4 = vpop.f32.mrb[64].mxu1  ;;  %v2020_v28 = vadd.f32 1.0, %v3776_v8 }
 0x3e1   :  { %3797 = vrcp.f32 %v1682_v19  ;;  %v4706_v25 = vpop.f32.mrb[68].mxu0  ;;  %v3780_v26 = vpop.eup %3779  ;;  %2101 = vrot.lane.b32.xlu0 %v3778_v43, %s4023_s6  ;;  %v3021_v43 = vmul.f32 -1.442695, %v4678_v34 }
 0x3e2   :  { %v4708_v30 = vpop.f32.mrb[65].mxu1  ;;  %v4711_v5 = vpop.f32.mrb[69].mxu0  ;;  %3799 = vpow2.f32 %v2976_v1  ;;  %2213 = vrot.lane.b32.xlu1 %v3780_v26, %s4023_s6 }
 0x3e3   :  { %v3782_v31 = vpop.eup %3781  ;;  %3801 = vrcp.f32 %v1680_v39 }
 0x3e4   :  { %v3784_v55 = vpop.eup %3783  ;;  %3803 = vpow2.f32 %v3020_v54  ;;  %v4716_v9 = vpop.f32.mrb[70].mxu0  ;;  %v2019_v20 = vadd.f32 1.0, %v3782_v31  ;;  %v3024_v54 = vmul.f32 -1.442695, %v4683_v57  ;;  %v2979_v57 = vmul.f32 -1.442695, %v4690_v15 }
 0x3e5   :  { %v3786_v46 = vpop.eup %3785  ;;  %3805 = vrcp.f32 %v2020_v28  ;;  %v4718_v2 = vpop.f32.mrb[71].mxu0  ;;  %v2977_v28 = vmul.f32 -1.442695, %v4681_v45 }
 0x3e6   :  { %v3788_v56 = vpop.eup %3787  ;;  %v1681_v37 = vadd.f32 1.0, %v3786_v46  ;;  %3807 = vpow2.f32 %v2975_v32  ;;  %2097 = vrot.lane.b32.xlu1 %v3784_v55, %s4023_s6  ;;  %v2980_v46 = vmul.f32 -1.442695, %v4686_v21 }
 0x3e7   :  { %v3790_v60 = vpop.eup %3789  ;;  %v1684_v22 = vadd.f32 1.0, %v3788_v56 }
 0x3e8   :  { %v3792_v12 = vpop.eup %3791  ;;  %3809 = vrcp.f32 %v1681_v37  ;;  %v4723_v3 = vpop.f32.mrb[72].mxu0  ;;  %v2022_v61 = vadd.f32 1.0, %v3790_v60  ;;  %v3023_v60 = vmul.f32 -1.442695, %v4688_v10 }
 0x3e9   :  { %v3794_v42 = vpop.eup %3793  ;;  %3811 = vpow2.f32 %v3019_v29  ;;  %v4725_v8 = vpop.f32.mrb[73].mxu0  ;;  %v2021_v1 = vadd.f32 1.0, %v3792_v12 }
 0x3ea   :  { %v3796_v49 = vpop.eup %3795  ;;  %3813 = vrcp.f32 %v2019_v20  ;;  %v1683_v33 = vadd.f32 1.0, %v3794_v42  ;;  %v2982_v42 = vmul.f32 -1.442695, %v4696_v52  ;;  %v3025_v52 = vmul.f32 -1.442695, %v4698_v7 }
 0x3eb   :  { %v3798_v19 = vpop.eup %3797  ;;  %3815 = vpow2.f32 %v3022_v24  ;;  %2211 = vrot.lane.b32.xlu1 %v3796_v49, %s4023_s6  ;;  %v3026_v49 = vmul.f32 -1.442695, %v4693_v50 }
 0x3ec   :  { %3817 = vrcp.f32 %v1684_v22  ;;  %2107 = vrot.lane.b32.xlu0 %v3798_v19, %s4023_s6  ;;  %v3800_v39 = vpop.eup %3799 }
 0x3ed   :  { %3819 = vpow2.f32 %v2978_v23  ;;  %v3802_v27 = vpop.eup %3801  ;;  %v1686_v32 = vadd.f32 1.0, %v3800_v39 }
 0x3ee   :  { %3821 = vrcp.f32 %v2022_v61  ;;  %v3804_v26 = vpop.eup %3803 }
 0x3ef   :  { %3823 = vrcp.f32 %v2021_v1  ;;  %2103 = vrot.lane.b32.xlu1 %v3802_v27, %s4023_s6  ;;  %v3806_v31 = vpop.eup %3805  ;;  %v2024_v34 = vadd.f32 1.0, %v3804_v26  ;;  %v2981_v1 = vmul.f32 -1.442695, %v4701_v36 }
 0x3f0   :  { %3825 = vrcp.f32 %v1683_v33  ;;  %v3808_v55 = vpop.eup %3807 }
 0x3f1   :  { %3827 = vpow2.f32 %v3021_v43  ;;  %v1685_v20 = vadd.f32 1.0, %v3808_v55 }
 0x3f2   :  { %v3810_v29 = vpop.eup %3809  ;;  %3829 = vpow2.f32 %v3024_v54 }
 0x3f3   :  { %v3812_v56 = vpop.eup %3811  ;;  %3831 = vpow2.f32 %v2977_v28  ;;  %2105 = vrot.lane.b32.xlu0 %v3810_v29, %s4023_s6  ;;  %2217 = vrot.lane.b32.xlu1 %v3806_v31, %s4023_s6  ;;  %v2984_v28 = vmul.f32 -1.442695, %v4706_v25  ;;  %v2983_v29 = vmul.f32 -1.442695, %v4711_v5  ;;  %v3028_v25 = vmul.f32 -1.442695, %v4704_v4 }
 0x3f4   :  { %v3814_v45 = vpop.eup %3813  ;;  %3833 = vrcp.f32 %v1686_v32  ;;  %v2023_v21 = vadd.f32 1.0, %v3812_v56  ;;  %v3027_v32 = vmul.f32 -1.442695, %v4708_v30 }
 0x3f5   :  { %v3816_v37 = vpop.eup %3815  ;;  %3835 = vpow2.f32 %v2980_v46 }
 0x3f6   :  { %v3818_v24 = vpop.eup %3817  ;;  %3837 = vrcp.f32 %v2024_v34  ;;  %v2026_v61 = vadd.f32 1.0, %v3816_v37  ;;  %v2986_v37 = vmul.f32 -1.442695, %v4716_v9 }
 0x3f7   :  { %v3820_v12 = vpop.eup %3819  ;;  %3839 = vpow2.f32 %v2979_v57  ;;  %2111 = vrot.lane.b32.xlu0 %v3818_v24, %s4023_s6  ;;  %2215 = vrot.lane.b32.xlu1 %v3814_v45, %s4023_s6 }
 0x3f8   :  { %v3822_v15 = vpop.eup %3821  ;;  %3841 = vrcp.f32 %v1685_v20  ;;  %v1688_v22 = vadd.f32 1.0, %v3820_v12 }
 0x3f9   :  { %v3824_v23 = vpop.eup %3823  ;;  %3843 = vpow2.f32 %v3023_v60 }
 0x3fa   :  { %v3826_v10 = vpop.eup %3825  ;;  %3845 = vrcp.f32 %v2023_v21 }
 0x3fb   :  { %v3828_v19 = vpop.eup %3827  ;;  %3847 = vrcp.f32 %v1688_v22  ;;  %2109 = vrot.lane.b32.xlu0 %v3826_v10, %s4023_s6  ;;  %2221 = vrot.lane.b32.xlu1 %v3822_v15, %s4023_s6  ;;  %v2985_v15 = vmul.f32 -1.442695, %v4718_v2 }
 0x3fc   :  { %v3830_v33 = vpop.eup %3829  ;;  %3849 = vpow2.f32 %v2982_v42  ;;  %v2025_v50 = vadd.f32 1.0, %v3828_v19 }
 0x3fd   :  { %v3832_v39 = vpop.eup %3831  ;;  %3851 = vpow2.f32 %v3026_v49  ;;  %v2028_v55 = vadd.f32 1.0, %v3830_v33 }
 0x3fe   :  { %v3834_v43 = vpop.eup %3833  ;;  %3853 = vrcp.f32 %v2026_v61  ;;  %v1687_v27 = vadd.f32 1.0, %v3832_v39  ;;  %v2987_v61 = vmul.f32 -1.442695, %v4725_v8 }
 0x3ff   :  { %v3836_v54 = vpop.eup %3835  ;;  %3855 = vpow2.f32 %v2981_v1  ;;  %2115 = vrot.lane.b32.xlu0 %v3834_v43, %s4023_s6  ;;  %2219 = vrot.lane.b32.xlu1 %v3824_v23, %s4023_s6  ;;  %v2988_v43 = vmul.f32 -1.442695, %v4723_v3 }
 0x400   :  { %v3838_v36 = vpop.eup %3837  ;;  %3857 = vrcp.f32 %v1687_v27  ;;  %v1690_v26 = vadd.f32 1.0, %v3836_v54 }
 0x401   :  { %v3840_v31 = vpop.eup %3839  ;;  %3859 = vpow2.f32 %v3025_v52 }
 0x402   :  { %v3842_v7 = vpop.eup %3841  ;;  %3861 = vrcp.f32 %v2025_v50  ;;  %v1689_v56 = vadd.f32 1.0, %v3840_v31 }
 0x403   :  { %v3844_v46 = vpop.eup %3843  ;;  %3863 = vrcp.f32 %v1690_v26  ;;  %2113 = vrot.lane.b32.xlu0 %v3842_v7, %s4023_s6  ;;  %2225 = vrot.lane.b32.xlu1 %v3838_v36, %s4023_s6 }
 0x404   :  { %v3846_v34 = vpop.eup %3845  ;;  %3865 = vpow2.f32 %v2984_v28  ;;  %v2027_v30 = vadd.f32 1.0, %v3844_v46 }
 0x405   :  { %v3848_v57 = vpop.eup %3847  ;;  %3867 = vpow2.f32 %v3027_v32 }
 0x406   :  { %v3850_v45 = vpop.eup %3849  ;;  %3869 = vrcp.f32 %v2028_v55 }
 0x407   :  { %v3852_v20 = vpop.eup %3851  ;;  %3871 = vpow2.f32 %v2983_v29  ;;  %2119 = vrot.lane.b32.xlu0 %v3848_v57, %s4023_s6  ;;  %2223 = vrot.lane.b32.xlu1 %v3846_v34, %s4023_s6  ;;  %v1692_v60 = vadd.f32 1.0, %v3850_v45 }
 0x408   :  { %v3854_v5 = vpop.eup %3853  ;;  %3873 = vrcp.f32 %v1689_v56  ;;  %v2030_v4 = vadd.f32 1.0, %v3852_v20 }
 0x409   :  { %v3856_v24 = vpop.eup %3855  ;;  %3875 = vpow2.f32 %v3028_v25 }
 0x40a   :  { %v3858_v21 = vpop.eup %3857  ;;  %3877 = vrcp.f32 %v2027_v30  ;;  %v1691_v22 = vadd.f32 1.0, %v3856_v24 }
 0x40b   :  { %v3860_v12 = vpop.eup %3859  ;;  %3879 = vpow2.f32 %v2986_v37  ;;  %2117 = vrot.lane.b32.xlu0 %v3858_v21, %s4023_s6  ;;  %2229 = vrot.lane.b32.xlu1 %v3854_v5, %s4023_s6 }
 0x40c   :  { %v3862_v9 = vpop.eup %3861  ;;  %3881 = vrcp.f32 %v1692_v60  ;;  %v2029_v49 = vadd.f32 1.0, %v3860_v12 }
 0x40d   :  { %v3864_v42 = vpop.eup %3863  ;;  %3883 = vrcp.f32 %v2030_v4  ;;  %v2871_v4 = vmul.f32 -1.442695, %v4368_v41 }
 0x40e   :  { %v3866_v23 = vpop.eup %3865  ;;  %3885 = vpow2.f32 %v2985_v15  ;;  %v2872_v15 = vmul.f32 -1.442695, %v4364_v38  ;;  %v2911_v38 = vmul.f32 -1.442695, %v4362_v35 }
 0x40f   :  { %v3868_v10 = vpop.eup %3867  ;;  %2123 = vrot.lane.b32.xlu0 %v3864_v42, %s4023_s6  ;;  %2227 = vrot.lane.b32.xlu1 %v3862_v9, %s4023_s6  ;;  %3887 = vrcp.f32 %v1691_v22  ;;  %v1694_v19 = vadd.f32 1.0, %v3866_v23  ;;  %v2912_v23 = vmul.f32 -1.442695, %v4360_v17  ;;  %v2914_v17 = vmul.f32 -1.442695, %v4366_v40 }
 0x410   :  { %v3870_v2 = vpop.eup %3869  ;;  %3889 = vrcp.f32 %v2029_v49  ;;  %v2031_v39 = vadd.f32 1.0, %v3868_v10  ;;  %v2915_v40 = vmul.f32 -1.442695, %v4380_v16 }
 0x411   :  { %v3872_v1 = vpop.eup %3871  ;;  %3891 = vpow2.f32 %v2987_v61  ;;  %v2913_v61 = vmul.f32 -1.442695, %v4370_v44 }
 0x412   :  { %v3874_v33 = vpop.eup %3873  ;;  %3893 = vrcp.f32 %v1694_v19  ;;  %v1693_v50 = vadd.f32 1.0, %v3872_v1 }
 0x413   :  { %v3876_v52 = vpop.eup %3875  ;;  %2121 = vrot.lane.b32.xlu0 %v3874_v33, %s4023_s6  ;;  %2233 = vrot.lane.b32.xlu1 %v3870_v2, %s4023_s6  ;;  %3895 = vrcp.f32 %v2031_v39  ;;  %v2916_v2 = vmul.f32 -1.442695, %v4374_v6 }
 0x414   :  { %v3878_v8 = vpop.eup %3877  ;;  %v2032_v36 = vadd.f32 1.0, %v3876_v52  ;;  %3897 = vpow2.f32 %v2988_v43 }
 0x415   :  { %v3880_v27 = vpop.eup %3879  ;;  %3899 = vrcp.f32 %v1693_v50 }
 0x416   :  { %v3882_v54 = vpop.eup %3881  ;;  %v1696_v3 = vadd.f32 1.0, %v3880_v27  ;;  %3901 = vrcp.f32 %v2032_v36 }
 0x417   :  { %2127 = vrot.lane.b32.xlu0 %v3882_v54, %s4023_s6  ;;  %2231 = vrot.lane.b32.xlu1 %v3878_v8, %s4023_s6  ;;  %v3884_v26 = vpop.eup %3883 }
 0x418   :  { %v3886_v28 = vpop.eup %3885  ;;  %3903 = vrcp.f32 %v1696_v3 }
 0x419   :  { %v3888_v31 = vpop.eup %3887  ;;  %v1695_v7 = vadd.f32 1.0, %v3886_v28 }
 0x41a   :  { %v3890_v32 = vpop.eup %3889 }
 0x41b   :  { %2125 = vrot.lane.b32.xlu0 %v3888_v31, %s4023_s6  ;;  %2237 = vrot.lane.b32.xlu1 %v3884_v26, %s4023_s6  ;;  %v3892_v55 = vpop.eup %3891  ;;  %3905 = vrcp.f32 %v1695_v7 }
 0x41c   :  { %v3894_v46 = vpop.eup %3893  ;;  %v1697_v34 = vadd.f32 1.0, %v3892_v55  ;;  %v5112_v55 = vld [vmem:[#allocation22_spill] sm:$0xff] }
 0x41d   :  { %v3896_v29 = vpop.eup %3895 }
 0x41e   :  { %v3898_v56 = vpop.eup %3897  ;;  %3907 = vrcp.f32 %v1697_v34 }
 0x41f   :  { %2131 = vrot.lane.b32.xlu0 %v3894_v46, %s4023_s6  ;;  %2235 = vrot.lane.b32.xlu1 %v3890_v32, %s4023_s6  ;;  %v3900_v57 = vpop.eup %3899  ;;  %v1698_v25 = vadd.f32 1.0, %v3898_v56  ;;  %v5111_v32 = vld [vmem:[#allocation6_spill] sm:$0xff]  ;;  %v5114_v56 = vld [vmem:[#allocation21_spill] sm:$0xff] }
 0x420   :  { %v3902_v45 = vpop.eup %3901  ;;  %v2877_v7 = vmul.f32 -1.442695, %v5111_v32 }
 0x421   :  { %3909 = vrcp.f32 %v1698_v25 }
 0x422   :  { %v3904_v30 = vpop.eup %3903  ;;  %3911 = vpow2.f32 %v2871_v4  ;;  %v5116_v4 = vld [vmem:[#allocation17_spill] sm:$0xff] }
 0x423   :  { %2129 = vrot.lane.b32.xlu0 %v3900_v57, %s4023_s6  ;;  %2239 = vrot.lane.b32.xlu1 %v3896_v29, %s4023_s6  ;;  %3913 = vpow2.f32 %v2872_v15  ;;  %v5113_v29 = vld [vmem:[#allocation4_spill] sm:$0xff] }
 0x424   :  { %3915 = vpow2.f32 %v2912_v23  ;;  %v2878_v34 = vmul.f32 -1.442695, %v5113_v29 }
 0x425   :  { %v3906_v20 = vpop.eup %3905  ;;  %3917 = vpow2.f32 %v2911_v38  ;;  %v5118_v38 = vld [vmem:[#allocation8_spill] sm:$0xff] }
 0x427   :  { %2135 = vrot.lane.b32.xlu0 %v3904_v30, %s4023_s6  ;;  %2241 = vrot.lane.b32.xlu1 %v3902_v45, %s4023_s6 }
 0x428   :  { %v3908_v37 = vpop.eup %3907 }
 0x42b   :  { %2133 = vrot.lane.b32.xlu0 %v3906_v20, %s4023_s6  ;;  %v3910_v5 = vpop.eup %3909 }
 0x42c   :  { %v3912_v19 = vpop.eup %3911 }
 0x42d   :  { %v3914_v44 = vpop.eup %3913  ;;  %v743_v39 = vadd.f32 1.0, %v3912_v19 }
 0x42e   :  { %v3916_v33 = vpop.eup %3915 }
 0x42f   :  { %2137 = vrot.lane.b32.xlu0 %v3908_v37, %s4023_s6  ;;  %v3918_v52 = vpop.eup %3917  ;;  %v1081_v8 = vadd.f32 1.0, %v3916_v33 }
 0x430   :  { %v1080_v27 = vadd.f32 1.0, %v3918_v52 }
 0x433   :  { %2139 = vrot.lane.b32.xlu0 %v3910_v5, %s4023_s6 }
 0x448   :  { %v2210_v60 = vpop.permute.xlu1 %2209 }
 0x449   :  { %v2262_v9 = vsel %vm405_vm2, %v4378_v48, %v2210_v60  ;;  %v2873_v48 = vmul.f32 -1.442695, %v4376_v47 }
 0x44a   :  { %v2096_v24 = vpop.permute.xlu0 %2095 }
 0x44b   :  { %v2166_v41 = vsel %vm405_vm2, %v4392_v59, %v2096_v24  ;;  %3919 = vpow2.f32 %v2873_v48  ;;  %v5115_v24 = vld [vmem:[#allocation3_spill] sm:$0xff]  ;;  %v2880_v48 = vmul.f32 -1.442695, %v5118_v38 }
 0x44c   :  { %v2208_v21 = vpop.permute.xlu1 %2207 }
 0x44d   :  { %v2261_v12 = vsel %vm405_vm2, %v4382_v51, %v2208_v21  ;;  %v2917_v21 = vmul.f32 -1.442695, %v5115_v24 }
 0x44e   :  { %3581 = vmatprep.mubr.msk.f32.mxu0 %vm273_vm1, %v2261_v12  ;;  %v2094_v22 = vpop.permute.xlu0 %2093 }
 0x44f   :  { %3582 = vmatmul.mubr.msk.f32.vlgmr.msra.gmra.mrb[74].mxu0 %vm273_vm1, %v2262_v9  ;;  %v2165_v42 = vsel %vm405_vm2, %v4396_v62, %v2094_v22  ;;  %v2874_v62 = vmul.f32 -1.442695, %v4372_v0  ;;  %v5117_v22 = vld [vmem:[#allocation15_spill] sm:$0xff] }
 0x450   :  { %v2100_v49 = vpop.permute.xlu1 %2099  ;;  %3529 = vmatprep.mubr.msk.f32.mxu1 %vm273_vm1, %v2165_v42 }
 0x451   :  { %3530 = vmatmul.mubr.msk.f32.vlgmr.msra.gmra.mrb[66].mxu1 %vm273_vm1, %v2166_v41  ;;  %3921 = vpow2.f32 %v2874_v62  ;;  %v2168_v47 = vsel %vm405_vm2, %v4406_v11, %v2100_v49  ;;  %v2875_v11 = vmul.f32 -1.442695, %v4390_v58 }
 0x452   :  { %3923 = vpow2.f32 %v2914_v17 }
 0x453   :  { %v2102_v59 = vpop.permute.xlu0 %2101  ;;  %3925 = vpow2.f32 %v2913_v61 }
 0x454   :  { %v2214_v51 = vpop.permute.xlu1 %2213  ;;  %v2169_v0 = vsel %vm405_vm2, %v4434_v63, %v2102_v59  ;;  %3927 = vpow2.f32 %v2916_v2  ;;  %v5119_v59 = vld [vmem:[#allocation10_spill] sm:$0xff] }
 0x455   :  { %v2264_v16 = vsel %vm405_vm2, %v4410_v13, %v2214_v51  ;;  %3929 = vpow2.f32 %v2915_v40  ;;  %v3920_v58 = vpop.eup %3919  ;;  %v5110_v13 = vld [vmem:[#allocation2_spill] sm:$0xff] }
 0x456   :  { %v2918_v54 = vmul.f32 -1.442695, %v5110_v13  ;;  %v745_v26 = vadd.f32 1.0, %v3920_v58 }
 0x458   :  { %v2098_v10 = vpop.permute.xlu1 %2097 }
 0x459   :  { %v2167_v35 = vsel %vm405_vm2, %v4412_v14, %v2098_v10  ;;  %v2876_v14 = vmul.f32 -1.442695, %v4384_v53  ;;  %v744_v53 = vadd.f32 1.0, %v3914_v44  ;;  %v2879_v10 = vmul.f32 -1.442695, %v5119_v59 }
 0x45a   :  { %3532 = vmatprep.mubr.msk.f32.mxu1 %vm273_vm1, %v2167_v35 }
 0x45b   :  { %3533 = vmatmul.mubr.msk.f32.gmra.mrb[68].mxu1 %vm273_vm1, %v2168_v47  ;;  %3931 = vpow2.f32 %v2876_v14  ;;  %v3922_v36 = vpop.eup %3921 }
 0x45c   :  { %3535 = vmatprep.mubr.msk.f32.mxu1 %vm273_vm1, %v2169_v0  ;;  %3933 = vpow2.f32 %v2875_v11  ;;  %v3924_v31 = vpop.eup %3923  ;;  %v746_v45 = vadd.f32 1.0, %v3922_v36  ;;  %v5120_v11 = vld [vmem:[#allocation7_spill] sm:$0xff]  ;;  %v5124_v36 = vld [vmem:[#allocation14_spill] sm:$0xff] }
 0x45d   :  { %v2212_v6 = vpop.permute.xlu1 %2211  ;;  %3935 = vrcp.f32 %v743_v39  ;;  %v3926_v25 = vpop.eup %3925  ;;  %v1083_v20 = vadd.f32 1.0, %v3924_v31 }
 0x45e   :  { %v2263_v1 = vsel %vm405_vm2, %v4416_v18, %v2212_v6  ;;  %v2108_v63 = vpop.permute.xlu0 %2107  ;;  %v5109_v18 = vld [vmem:[#allocation12_spill] sm:$0xff]  ;;  %3937 = vrcp.f32 %v744_v53  ;;  %v3928_v30 = vpop.eup %3927  ;;  %v1082_v9 = vadd.f32 1.0, %v3926_v25 }
 0x45f   :  { %3584 = vmatprep.mubr.msk.f32.mxu0 %vm273_vm1, %v2263_v1  ;;  %3939 = vrcp.f32 %v1081_v8  ;;  %v2172_v57 = vsel %vm405_vm2, %v5114_v56, %v2108_v63  ;;  %v3930_v60 = vpop.eup %3929  ;;  %v1085_v41 = vadd.f32 1.0, %v3928_v30  ;;  %v2919_v1 = vmul.f32 -1.442695, %v5120_v11 }
 0x460   :  { %3585 = vmatmul.mubr.msk.f32.gmra.mrb[76].mxu0 %vm273_vm1, %v2264_v16  ;;  %3941 = vrcp.f32 %v1080_v27  ;;  %v1084_v0 = vadd.f32 1.0, %v3930_v60  ;;  %v5121_v16 = vld [vmem:[#allocation5_spill] sm:$0xff] }
 0x461   :  { %v2104_v43 = vpop.permute.xlu1 %2103  ;;  %3943 = vpow2.f32 %v2918_v54  ;;  %v2920_v63 = vmul.f32 -1.442695, %v5121_v16 }
 0x462   :  { %v2170_v50 = vsel %vm405_vm2, %v5109_v18, %v2104_v43  ;;  %3945 = vrcp.f32 %v745_v26  ;;  %v5122_v43 = vld [vmem:[#allocation11_spill] sm:$0xff]  ;;  %v5123_v18 = vld [vmem:[#allocation13_spill] sm:$0xff]  ;;  %v2881_v26 = vmul.f32 -1.442695, %v5124_v36 }
 0x463   :  { %3536 = vmatmul.mubr.msk.f32.gmra.mrb[70].mxu1 %vm273_vm1, %v2170_v50  ;;  %3947 = vpow2.f32 %v2877_v7  ;;  %v2921_v58 = vmul.f32 -1.442695, %v5122_v43  ;;  %v2882_v50 = vmul.f32 -1.442695, %v5123_v18 }
 0x464   :  { %3949 = vpow2.f32 %v2878_v34 }
 0x465   :  { %v2106_v3 = vpop.permute.xlu0 %2105  ;;  %v2218_v28 = vpop.permute.xlu1 %2217  ;;  %3951 = vrcp.f32 %v746_v45 }
 0x466   :  { %v2171_v46 = vsel %vm405_vm2, %v5112_v55, %v2106_v3  ;;  %v3932_v15 = vpop.eup %3931  ;;  %v2266_v42 = vsel %vm405_vm2, %v5117_v22, %v2218_v28  ;;  %3953 = vrcp.f32 %v1083_v20  ;;  %v5127_v22 = vld [vmem:[#allocation18_spill] sm:$0xff] }
 0x467   :  { %3538 = vmatprep.mubr.msk.f32.mxu1 %vm273_vm1, %v2171_v46  ;;  %v3934_v23 = vpop.eup %3933  ;;  %3955 = vpow2.f32 %v2917_v21  ;;  %v748_v19 = vadd.f32 1.0, %v3932_v15  ;;  %v5126_v21 = vld [vmem:[#allocation16_spill] sm:$0xff] }
 0x468   :  { %3539 = vmatmul.mubr.msk.f32.gmra.mrb[72].mxu1 %vm273_vm1, %v2172_v57  ;;  %v3936_v49 = vpop.eup %3935  ;;  %3957 = vrcp.f32 %v1082_v9  ;;  %v747_v35 = vadd.f32 1.0, %v3934_v23  ;;  %v5125_v57 = vld [vmem:[#allocation9_spill] sm:$0xff] }
 0x469   :  { %v2112_v37 = vpop.permute.xlu0 %2111  ;;  %v2216_v5 = vpop.permute.xlu1 %2215  ;;  %3959 = vrcp.f32 %v1085_v41  ;;  %v2922_v25 = vmul.f32 -1.442695, %v5125_v57 }
 0x46a   :  { %v2265_v12 = vsel %vm405_vm2, %v5116_v4, %v2216_v5  ;;  %v3938_v17 = vpop.eup %3937  ;;  %3961 = vpow2.f32 %v2880_v48  ;;  %v2884_v4 = vmul.f32 -1.442695, %v5126_v21 }
 0x46b   :  { %3587 = vmatprep.mubr.msk.f32.mxu0 %vm273_vm1, %v2265_v12  ;;  %v2174_v2 = vsel %vm405_vm2, %v3938_v17, %v2112_v37  ;;  %v3940_v47 = vpop.eup %3939  ;;  %3963 = vpow2.f32 %v2879_v10 }
 0x46c   :  { %3588 = vmatmul.mubr.msk.f32.gmra.mrb[78].mxu0 %vm273_vm1, %v2266_v42  ;;  %v3942_v40 = vpop.eup %3941  ;;  %3965 = vrcp.f32 %v747_v35  ;;  %v2883_v42 = vmul.f32 -1.442695, %v5127_v22 }
 0x46d   :  { %v2110_v51 = vpop.permute.xlu0 %2109  ;;  %v2222_v62 = vpop.permute.xlu1 %2221  ;;  %3967 = vrcp.f32 %v748_v19 }
 0x46e   :  { %v2173_v61 = vsel %vm405_vm2, %v3936_v49, %v2110_v51  ;;  %v3944_v6 = vpop.eup %3943  ;;  %v2268_v52 = vsel %vm405_vm2, %v3940_v47, %v2222_v62  ;;  %3969 = vrcp.f32 %v1084_v0 }
 0x46f   :  { %3541 = vmatprep.mubr.msk.f32.mxu1 %vm273_vm1, %v2173_v61  ;;  %v3946_v39 = vpop.eup %3945  ;;  %3971 = vpow2.f32 %v2919_v1  ;;  %v1087_v60 = vadd.f32 1.0, %v3944_v6  ;;  %v5128_v61 = vld [vmem:[#allocation20_spill] sm:$0xff]  ;;  %v5129_v6 = vld [vmem:[#allocation19_spill] sm:$0xff] }
 0x470   :  { %3542 = vmatmul.mubr.msk.f32.gmra.mrb[74].mxu1 %vm273_vm1, %v2174_v2  ;;  %v3948_v53 = vpop.eup %3947  ;;  %3973 = vpow2.f32 %v2920_v63  ;;  %v2885_v35 = vmul.f32 -1.442695, %v5128_v61  ;;  %v2886_v11 = vmul.f32 -1.442695, %v5129_v6 }
 0x471   :  { %v2116_v44 = vpop.permute.xlu0 %2115  ;;  %v2220_v14 = vpop.permute.xlu1 %2219  ;;  %v749_v31 = vadd.f32 1.0, %v3948_v53  ;;  %3975 = vpow2.f32 %v2921_v58 }
 0x472   :  { %v2267_v33 = vsel %vm405_vm2, %v3942_v40, %v2220_v14  ;;  %v3950_v8 = vpop.eup %3949  ;;  %3977 = vpow2.f32 %v2882_v50 }
 0x473   :  { %3590 = vmatprep.mubr.msk.f32.mxu0 %vm273_vm1, %v2267_v33  ;;  %v3952_v54 = vpop.eup %3951  ;;  %v750_v55 = vadd.f32 1.0, %v3950_v8  ;;  %3979 = vpow2.f32 %v2881_v26 }
 0x474   :  { %3591 = vmatmul.mubr.msk.f32.gmra.mrb[80].mxu0 %vm273_vm1, %v2268_v52  ;;  %v3954_v28 = vpop.eup %3953  ;;  %v2176_v32 = vsel %vm405_vm2, %v3952_v54, %v2116_v44  ;;  %3981 = vrcp.f32 %v749_v31 }
 0x475   :  { %v2114_v27 = vpop.permute.xlu0 %2113  ;;  %v2226_v13 = vpop.permute.xlu1 %2225  ;;  %3983 = vrcp.f32 %v750_v55 }
 0x476   :  { %v2175_v3 = vsel %vm405_vm2, %v3946_v39, %v2114_v27  ;;  %v3956_v7 = vpop.eup %3955  ;;  %v2270_v37 = vsel %vm405_vm2, %v3954_v28, %v2226_v13  ;;  %3985 = vpow2.f32 %v2922_v25 }
 0x477   :  { %3544 = vmatprep.mubr.msk.f32.mxu1 %vm273_vm1, %v2175_v3  ;;  %v3958_v46 = vpop.eup %3957  ;;  %v1086_v20 = vadd.f32 1.0, %v3956_v7 }
 0x478   :  { %3545 = vmatmul.mubr.msk.f32.gmra.mrb[76].mxu1 %vm273_vm1, %v2176_v32  ;;  %v3960_v56 = vpop.eup %3959 }
 0x479   :  { %v2120_v29 = vpop.permute.xlu0 %2119  ;;  %v2224_v34 = vpop.permute.xlu1 %2223  ;;  %3987 = vrcp.f32 %v1086_v20 }
 0x47a   :  { %v2269_v45 = vsel %vm405_vm2, %v3958_v46, %v2224_v34  ;;  %v3962_v30 = vpop.eup %3961  ;;  %3989 = vrcp.f32 %v1087_v60 }
 0x47b   :  { %3593 = vmatprep.mubr.msk.f32.mxu0 %vm273_vm1, %v2269_v45  ;;  %v3964_v5 = vpop.eup %3963  ;;  %v752_v51 = vadd.f32 1.0, %v3962_v30  ;;  %3991 = vpow2.f32 %v2884_v4 }
 0x47c   :  { %3594 = vmatmul.mubr.msk.f32.gmra.mrb[82].mxu0 %vm273_vm1, %v2270_v37  ;;  %v3966_v24 = vpop.eup %3965  ;;  %v751_v49 = vadd.f32 1.0, %v3964_v5  ;;  %3993 = vpow2.f32 %v2883_v42 }
 0x47d   :  { %v2118_v12 = vpop.permute.xlu0 %2117  ;;  %v2230_v15 = vpop.permute.xlu1 %2229 }
 0x47e   :  { %v3968_v9 = vpop.eup %3967  ;;  %v2177_v23 = vsel %vm405_vm2, %v3966_v24, %v2118_v12  ;;  %3995 = vrcp.f32 %v751_v49  ;;  %v2272_v40 = vsel %vm405_vm2, %v3960_v56, %v2230_v15 }
 0x47f   :  { %v3970_v41 = vpop.eup %3969  ;;  %v2178_v38 = vsel %vm405_vm2, %v3968_v9, %v2120_v29  ;;  %3547 = vmatprep.mubr.msk.f32.mxu1 %vm273_vm1, %v2177_v23  ;;  %3997 = vrcp.f32 %v752_v51 }
 0x480   :  { %v3972_v48 = vpop.eup %3971  ;;  %3548 = vmatmul.mubr.msk.f32.gmra.mrb[78].mxu1 %vm273_vm1, %v2178_v38  ;;  %3999 = vpow2.f32 %v2885_v35 }
 0x481   :  { %v3974_v62 = vpop.eup %3973  ;;  %v2124_v17 = vpop.permute.xlu0 %2123  ;;  %v1088_v19 = vadd.f32 1.0, %v3972_v48 }
 0x482   :  { %v2228_v59 = vpop.permute.xlu1 %2227  ;;  %v3976_v10 = vpop.eup %3975  ;;  %v1089_v44 = vadd.f32 1.0, %v3974_v62 }
 0x483   :  { %v2271_v2 = vsel %vm405_vm2, %v3970_v41, %v2228_v59  ;;  %v3978_v47 = vpop.eup %3977  ;;  %v1090_v16 = vadd.f32 1.0, %v3976_v10  ;;  %4001 = vrcp.f32 %v1088_v19 }
 0x484   :  { %3596 = vmatprep.mubr.msk.f32.mxu0 %vm273_vm1, %v2271_v2  ;;  %v3980_v0 = vpop.eup %3979  ;;  %4003 = vrcp.f32 %v1089_v44  ;;  %v754_v58 = vadd.f32 1.0, %v3978_v47 }
 0x485   :  { %3597 = vmatmul.mubr.msk.f32.gmra.mrb[84].mxu0 %vm273_vm1, %v2272_v40  ;;  %v3982_v14 = vpop.eup %3981  ;;  %v2122_v1 = vpop.permute.xlu0 %2121  ;;  %v753_v52 = vadd.f32 1.0, %v3980_v0  ;;  %4005 = vpow2.f32 %v2886_v11 }
 0x486   :  { %v2234_v33 = vpop.permute.xlu1 %2233  ;;  %v3984_v39 = vpop.eup %3983  ;;  %v2179_v63 = vsel %vm405_vm2, %v3982_v14, %v2122_v1  ;;  %4007 = vrcp.f32 %v1090_v16 }
 0x487   :  { %v2180_v53 = vsel %vm405_vm2, %v3984_v39, %v2124_v17  ;;  %3550 = vmatprep.mubr.msk.f32.mxu1 %vm273_vm1, %v2179_v63  ;;  %v3986_v43 = vpop.eup %3985  ;;  %4009 = vrcp.f32 %v753_v52 }
 0x488   :  { %3551 = vmatmul.mubr.msk.f32.gmra.mrb[80].mxu1 %vm273_vm1, %v2180_v53  ;;  %v3988_v8 = vpop.eup %3987  ;;  %v1091_v36 = vadd.f32 1.0, %v3986_v43  ;;  %4011 = vrcp.f32 %v754_v58 }
 0x489   :  { %v2128_v18 = vpop.permute.xlu0 %2127  ;;  %v3990_v27 = vpop.eup %3989 }
 0x48a   :  { %v2232_v50 = vpop.permute.xlu1 %2231  ;;  %v3992_v54 = vpop.eup %3991  ;;  %v2274_v26 = vsel %vm405_vm2, %v3990_v27, %v2234_v33  ;;  %4013 = vrcp.f32 %v1091_v36 }
 0x48b   :  { %v2273_v13 = vsel %vm405_vm2, %v3988_v8, %v2232_v50  ;;  %v3994_v3 = vpop.eup %3993  ;;  %v756_v56 = vadd.f32 1.0, %v3992_v54 }
 0x48c   :  { %3599 = vmatprep.mubr.msk.f32.mxu0 %vm273_vm1, %v2273_v13  ;;  %v3996_v28 = vpop.eup %3995  ;;  %v755_v46 = vadd.f32 1.0, %v3994_v3 }
 0x48d   :  { %3600 = vmatmul.mubr.msk.f32.gmra.mrb[86].mxu0 %vm273_vm1, %v2274_v26  ;;  %v2126_v31 = vpop.permute.xlu0 %2125  ;;  %v3998_v7 = vpop.eup %3997 }
 0x48e   :  { %v2238_v32 = vpop.permute.xlu1 %2237  ;;  %v2181_v55 = vsel %vm405_vm2, %v3996_v28, %v2126_v31  ;;  %v2182_v29 = vsel %vm405_vm2, %v3998_v7, %v2128_v18  ;;  %v4000_v34 = vpop.eup %3999  ;;  %4015 = vrcp.f32 %v755_v46 }
 0x48f   :  { %3553 = vmatprep.mubr.msk.f32.mxu1 %vm273_vm1, %v2181_v55  ;;  %v4002_v57 = vpop.eup %4001  ;;  %v757_v5 = vadd.f32 1.0, %v4000_v34  ;;  %4017 = vrcp.f32 %v756_v56 }
 0x490   :  { %3554 = vmatmul.mubr.msk.f32.gmra.mrb[82].mxu1 %vm273_vm1, %v2182_v29  ;;  %v4004_v30 = vpop.eup %4003 }
 0x491   :  { %v2132_v25 = vpop.permute.xlu0 %2131  ;;  %v4006_v37 = vpop.eup %4005  ;;  %v2276_v60 = vsel %vm405_vm2, %v4004_v30, %v2238_v32  ;;  %4019 = vrcp.f32 %v757_v5 }
 0x492   :  { %v2236_v45 = vpop.permute.xlu1 %2235  ;;  %v4008_v24 = vpop.eup %4007  ;;  %v758_v42 = vadd.f32 1.0, %v4006_v37 }
 0x493   :  { %v2275_v20 = vsel %vm405_vm2, %v4002_v57, %v2236_v45  ;;  %v4010_v21 = vpop.eup %4009 }
 0x494   :  { %3602 = vmatprep.mubr.msk.f32.mxu0 %vm273_vm1, %v2275_v20  ;;  %v4012_v15 = vpop.eup %4011  ;;  %4021 = vrcp.f32 %v758_v42 }
 0x495   :  { %3603 = vmatmul.mubr.msk.f32.gmra.mrb[88].mxu0 %vm273_vm1, %v2276_v60  ;;  %v2130_v4 = vpop.permute.xlu0 %2129  ;;  %v2184_v23 = vsel %vm405_vm2, %v4012_v15, %v2132_v25  ;;  %v4014_v41 = vpop.eup %4013 }
 0x496   :  { %v2240_v12 = vpop.permute.xlu1 %2239  ;;  %v2183_v9 = vsel %vm405_vm2, %v4010_v21, %v2130_v4 }
 0x497   :  { %v2277_v22 = vsel %vm405_vm2, %v4008_v24, %v2240_v12  ;;  %3556 = vmatprep.mubr.msk.f32.mxu1 %vm273_vm1, %v2183_v9 }
 0x498   :  { %3605 = vmatprep.mubr.msk.f32.mxu0 %vm273_vm1, %v2277_v22  ;;  %3557 = vmatmul.mubr.msk.f32.gmra.mrb[84].mxu1 %vm273_vm1, %v2184_v23  ;;  %v4016_v51 = vpop.eup %4015 }
 0x499   :  { %v2136_v49 = vpop.permute.xlu0 %2135  ;;  %v4018_v17 = vpop.eup %4017 }
 0x49a   :  { %v2242_v38 = vpop.permute.xlu1 %2241  ;;  %v2186_v10 = vsel %vm405_vm2, %v4018_v17, %v2136_v49 }
 0x49b   :  { %v2278_v48 = vsel %vm405_vm2, %v4014_v41, %v2242_v38  ;;  %v4020_v61 = vpop.eup %4019 }
 0x49c   :  { %3606 = vmatmul.mubr.msk.f32.gmra.mrb[90].mxu0 %vm273_vm1, %v2278_v48 }
 0x49d   :  { %v2134_v62 = vpop.permute.xlu0 %2133 }
 0x49e   :  { %v2185_v59 = vsel %vm405_vm2, %v4016_v51, %v2134_v62  ;;  %v4022_v47 = vpop.eup %4021 }
 0x49f   :  { %3559 = vmatprep.mubr.msk.f32.mxu1 %vm273_vm1, %v2185_v59 }
 0x4a0   :  { %3560 = vmatmul.mubr.msk.f32.gmra.mrb[86].mxu1 %vm273_vm1, %v2186_v10 }
 0x4a1   :  { %v2138_v35 = vpop.permute.xlu0 %2137 }
 0x4a2   :  { %v2187_v2 = vsel %vm405_vm2, %v4020_v61, %v2138_v35 }
 0x4a3   :  { %3562 = vmatprep.mubr.msk.f32.mxu1 %vm273_vm1, %v2187_v2 }
 0x4a5   :  { %v2140_v19 = vpop.permute.xlu0 %2139 }
 0x4a6   :  { %v2188_v40 = vsel %vm405_vm2, %v4022_v47, %v2140_v19 }
 0x4a7   :  { %3563 = vmatmul.mubr.msk.f32.gmra.mrb[88].mxu1 %vm273_vm1, %v2188_v40 }
 0x522   :  { %v3583_v0 = vpop.f32.mrb[74].mxu0 }
 0x523   :  { %2786 = vst.msk [vmem:[%s5081_s9 + $0x8] sm:$0xff] %vm405_vm2, %v3583_v0  ;;  %v2696_v44 = vpop.f32.mrb[75].mxu0 }
 0x524   :  { %2785 = vst.msk [vmem:[%s5081_s9] sm:$0xff] %vm405_vm2, %v2696_v44  ;;  %v3531_v14 = vpop.f32.mrb[66].mxu1 }
 0x525   :  { %2545 = vst.msk [vmem:[%s5082_s8 + $0x8] sm:$0xff] %vm405_vm2, %v3531_v14  ;;  %v2425_v6 = vpop.f32.mrb[67].mxu1 }
 0x526   :  { %2544 = vst.msk [vmem:[%s5082_s8] sm:$0xff] %vm405_vm2, %v2425_v6 }
 0x52e   :  { %v3534_v11 = vpop.f32.mrb[68].mxu1 }
 0x52f   :  { %2547 = vst.msk [vmem:[%s5082_s8 + $0x18] sm:$0xff] %vm405_vm2, %v3534_v11  ;;  %v2435_v1 = vpop.f32.mrb[69].mxu1 }
 0x530   :  { %2546 = vst.msk [vmem:[%s5082_s8 + $0x10] sm:$0xff] %vm405_vm2, %v2435_v1 }
 0x533   :  { %v3586_v33 = vpop.f32.mrb[76].mxu0 }
 0x534   :  { %2788 = vst.msk [vmem:[%s5081_s9 + $0x18] sm:$0xff] %vm405_vm2, %v3586_v33  ;;  %v2706_v39 = vpop.f32.mrb[77].mxu0 }
 0x535   :  { %2787 = vst.msk [vmem:[%s5081_s9 + $0x10] sm:$0xff] %vm405_vm2, %v2706_v39 }
 0x536   :  { %v3537_v16 = vpop.f32.mrb[70].mxu1 }
 0x537   :  { %2549 = vst.msk [vmem:[%s5082_s8 + $0x28] sm:$0xff] %vm405_vm2, %v3537_v16  ;;  %v2445_v63 = vpop.f32.mrb[71].mxu1 }
 0x538   :  { %2548 = vst.msk [vmem:[%s5082_s8 + $0x20] sm:$0xff] %vm405_vm2, %v2445_v63 }
 0x53b   :  { %v3540_v52 = vpop.f32.mrb[72].mxu1 }
 0x53c   :  { %2551 = vst.msk [vmem:[%s5082_s8 + $0x38] sm:$0xff] %vm405_vm2, %v3540_v52  ;;  %v2455_v53 = vpop.f32.mrb[73].mxu1 }
 0x53d   :  { %2550 = vst.msk [vmem:[%s5082_s8 + $0x30] sm:$0xff] %vm405_vm2, %v2455_v53 }
 0x53f   :  { %v3589_v43 = vpop.f32.mrb[78].mxu0 }
 0x540   :  { %2790 = vst.msk [vmem:[%s5081_s9 + $0x28] sm:$0xff] %vm405_vm2, %v3589_v43  ;;  %v2716_v58 = vpop.f32.mrb[79].mxu0 }
 0x541   :  { %2789 = vst.msk [vmem:[%s5081_s9 + $0x20] sm:$0xff] %vm405_vm2, %v2716_v58 }
 0x543   :  { %v3543_v8 = vpop.f32.mrb[74].mxu1 }
 0x544   :  { %2553 = vst.msk [vmem:[%s5082_s8 + $0x48] sm:$0xff] %vm405_vm2, %v3543_v8  ;;  %v2465_v18 = vpop.f32.mrb[75].mxu1 }
 0x545   :  { %2552 = vst.msk [vmem:[%s5082_s8 + $0x40] sm:$0xff] %vm405_vm2, %v2465_v18 }
 0x547   :  { %v3592_v50 = vpop.f32.mrb[80].mxu0 }
 0x548   :  { %2792 = vst.msk [vmem:[%s5081_s9 + $0x38] sm:$0xff] %vm405_vm2, %v3592_v50  ;;  %v2726_v27 = vpop.f32.mrb[81].mxu0 }
 0x549   :  { %2791 = vst.msk [vmem:[%s5081_s9 + $0x30] sm:$0xff] %vm405_vm2, %v2726_v27 }
 0x54b   :  { %v3546_v13 = vpop.f32.mrb[76].mxu1 }
 0x54c   :  { %2555 = vst.msk [vmem:[%s5082_s8 + $0x58] sm:$0xff] %vm405_vm2, %v3546_v13  ;;  %v2475_v54 = vpop.f32.mrb[77].mxu1 }
 0x54d   :  { %2554 = vst.msk [vmem:[%s5082_s8 + $0x50] sm:$0xff] %vm405_vm2, %v2475_v54 }
 0x54f   :  { %v3595_v36 = vpop.f32.mrb[82].mxu0 }
 0x550   :  { %2794 = vst.msk [vmem:[%s5081_s9 + $0x48] sm:$0xff] %vm405_vm2, %v3595_v36  ;;  %v2736_v26 = vpop.f32.mrb[83].mxu0 }
 0x551   :  { %2793 = vst.msk [vmem:[%s5081_s9 + $0x40] sm:$0xff] %vm405_vm2, %v2736_v26 }
 0x553   :  { %v3549_v3 = vpop.f32.mrb[78].mxu1 }
 0x554   :  { %2557 = vst.msk [vmem:[%s5082_s8 + $0x68] sm:$0xff] %vm405_vm2, %v3549_v3  ;;  %v2485_v28 = vpop.f32.mrb[79].mxu1 }
 0x555   :  { %2556 = vst.msk [vmem:[%s5082_s8 + $0x60] sm:$0xff] %vm405_vm2, %v2485_v28 }
 0x558   :  { %v3598_v31 = vpop.f32.mrb[84].mxu0 }
 0x559   :  { %2796 = vst.msk [vmem:[%s5081_s9 + $0x58] sm:$0xff] %vm405_vm2, %v3598_v31  ;;  %v2746_v32 = vpop.f32.mrb[85].mxu0 }
 0x55a   :  { %2795 = vst.msk [vmem:[%s5081_s9 + $0x50] sm:$0xff] %vm405_vm2, %v2746_v32 }
 0x55b   :  { %v3552_v7 = vpop.f32.mrb[80].mxu1 }
 0x55c   :  { %2559 = vst.msk [vmem:[%s5082_s8 + $0x78] sm:$0xff] %vm405_vm2, %v3552_v7  ;;  %v2495_v55 = vpop.f32.mrb[81].mxu1 }
 0x55d   :  { %2558 = vst.msk [vmem:[%s5082_s8 + $0x70] sm:$0xff] %vm405_vm2, %v2495_v55 }
 0x560   :  { %v3601_v46 = vpop.f32.mrb[86].mxu0 }
 0x561   :  { %2798 = vst.msk [vmem:[%s5081_s9 + $0x68] sm:$0xff] %vm405_vm2, %v3601_v46  ;;  %v2756_v29 = vpop.f32.mrb[87].mxu0 }
 0x562   :  { %2797 = vst.msk [vmem:[%s5081_s9 + $0x60] sm:$0xff] %vm405_vm2, %v2756_v29 }
 0x563   :  { %v3555_v34 = vpop.f32.mrb[82].mxu1 }
 0x564   :  { %2561 = vst.msk [vmem:[%s5082_s8 + $0x88] sm:$0xff] %vm405_vm2, %v3555_v34  ;;  %v2505_v56 = vpop.f32.mrb[83].mxu1 }
 0x565   :  { %2560 = vst.msk [vmem:[%s5082_s8 + $0x80] sm:$0xff] %vm405_vm2, %v2505_v56 }
 0x568   :  { %v3604_v57 = vpop.f32.mrb[88].mxu0 }
 0x569   :  { %2800 = vst.msk [vmem:[%s5081_s9 + $0x78] sm:$0xff] %vm405_vm2, %v3604_v57  ;;  %v2766_v25 = vpop.f32.mrb[89].mxu0 }
 0x56a   :  { %2799 = vst.msk [vmem:[%s5081_s9 + $0x70] sm:$0xff] %vm405_vm2, %v2766_v25 }
 0x56b   :  { %v3558_v45 = vpop.f32.mrb[84].mxu1 }
 0x56c   :  { %2563 = vst.msk [vmem:[%s5082_s8 + $0x98] sm:$0xff] %vm405_vm2, %v3558_v45  ;;  %v2515_v30 = vpop.f32.mrb[85].mxu1 }
 0x56d   :  { %2562 = vst.msk [vmem:[%s5082_s8 + $0x90] sm:$0xff] %vm405_vm2, %v2515_v30 }
 0x56f   :  { %v3607_v20 = vpop.f32.mrb[90].mxu0 }
 0x570   :  { %2802 = vst.msk [vmem:[%s5081_s9 + $0x88] sm:$0xff] %vm405_vm2, %v3607_v20  ;;  %v2776_v37 = vpop.f32.mrb[91].mxu0 }
 0x571   :  { %2801 = vst.msk [vmem:[%s5081_s9 + $0x80] sm:$0xff] %vm405_vm2, %v2776_v37 }
 0x573   :  { %v3561_v5 = vpop.f32.mrb[86].mxu1 }
 0x574   :  { %2565 = vst.msk [vmem:[%s5082_s8 + $0xa8] sm:$0xff] %vm405_vm2, %v3561_v5  ;;  %v2525_v60 = vpop.f32.mrb[87].mxu1 }
 0x575   :  { %2564 = vst.msk [vmem:[%s5082_s8 + $0xa0] sm:$0xff] %vm405_vm2, %v2525_v60 }
 0x57a   :  { %v3564_v24 = vpop.f32.mrb[88].mxu1 }
 0x57b   :  { %2567 = vst.msk [vmem:[%s5082_s8 + $0xb8] sm:$0xff] %vm405_vm2, %v3564_v24  ;;  %v2535_v21 = vpop.f32.mrb[89].mxu1 }
 0x57c   :  { %2566 = vst.msk [vmem:[%s5082_s8 + $0xb0] sm:$0xff] %vm405_vm2, %v2535_v21 }

</bundles_post_ra>
